<compile_context>
chip_gen: v5e
topology: v5e:2x2
jax: 0.10.0
libtpu: 0.0.40
codegen_flags: <defaults>
</compile_context>

<pallas_src>
import functools

import jax
import jax.numpy as jnp
from jax.experimental import pallas as pl
from jax.experimental.pallas import tpu as pltpu


def _convlstm_kernel(comb_ref, w_ref, b_ref, c_ref, h_out_ref, c_out_ref,
                     patch_ref, *, K, W, th, chid):
    """One (batch element, row-block) tile per grid step.

    comb_ref : (1, H+2p, W+2p, Cin)   padded NHWC [x|h], resident per batch elem
    w_ref    : (K*K*Cin, 4*chid)      conv weights, (kh,kw,cin) x [i|f|o|g]
    b_ref    : (1, 4*chid)            conv bias (f32)
    c_ref    : (1, tile_m, chid)      previous cell state rows
    h_out_ref: (1, tile_m, chid)      next hidden state rows
    c_out_ref: (1, tile_m, chid)      next cell state rows
    patch_ref: (tile_m, K*K*Cin)      VMEM scratch for the im2col tile
    """
    r = pl.program_id(1)
    row0 = r * th
    tile_m = th * W
    cin = comb_ref.shape[-1]

    # In-kernel im2col: K*K statically-shifted slices of the resident padded
    # image, written into a lane-contiguous (tile_m, K*K*Cin) VMEM tile.
    for kh in range(K):
        for kw in range(K):
            sl = comb_ref[0, pl.ds(row0 + kh, th), pl.ds(kw, W), :]  # (th, W, cin)
            col = (kh * K + kw) * cin
            patch_ref[:, col:col + cin] = sl.reshape(tile_m, cin)

    # One deep MXU contraction (depth = K*K*Cin); f32 accumulation.
    acc = jnp.dot(patch_ref[...], w_ref[...], preferred_element_type=jnp.float32)
    acc = acc + b_ref[...].astype(jnp.float32)                 # (tile_m, 4*chid)

    # One fused sigmoid over the contiguous [i|f|o] lanes, one tanh for g.
    ifo = jax.nn.sigmoid(acc[:, :3 * chid])
    g = jnp.tanh(acc[:, 3 * chid:])
    i = ifo[:, :chid]
    f = ifo[:, chid:2 * chid]
    o = ifo[:, 2 * chid:3 * chid]

    # Gate algebra stays in the (tile_m, chid) layout of the c/h arrays:
    # no slab relayouts in the epilogue.
    c_prev = c_ref[0].astype(jnp.float32)
    c_next = f * c_prev + i * g
    h_next = o * jnp.tanh(c_next)

    h_out_ref[0] = h_next.astype(h_out_ref.dtype)
    c_out_ref[0] = c_next.astype(c_out_ref.dtype)


def _pick_row_tile(H, W, target_rows):
    """Pick a row-block height th: H % th == 0 and (th*W) % 8 == 0 (or th == H)."""
    divisors = [d for d in range(1, H + 1) if H % d == 0]
    valid = [d for d in divisors if (d * W) % 8 == 0 or d == H]
    if not valid:
        return H
    for d in valid:
        if d * W >= target_rows:
            return d
    return valid[-1]


def conv_lstm_cell(x_nchw, weight_oihw, bias, hidden_state=None, *,
                   target_tile_rows=128, use_bf16_matmul=True):
    """ConvLSTM cell forward.  Matches the PyTorch ConvLSTMCell.forward.

    x_nchw      : (B, Cin_x, H, W)                       input (NCHW)
    weight_oihw : (4*Chid, Cin_x + Chid, K, K)           conv weight (PyTorch layout)
    bias        : (4*Chid,)                              conv bias
    hidden_state: optional (h, c), each (B, Chid, H, W)  NCHW
    returns     : (h_next, c_next), each (B, Chid, H, W) NCHW
    """
    B, Cin_x, H, W = x_nchw.shape
    Cout, Cin, K, _ = weight_oihw.shape
    Chid = Cout // 4
    assert Cin == Cin_x + Chid, "weight in_channels must equal input+hidden channels"
    pad = K // 2
    dtype = x_nchw.dtype

    if hidden_state is None:
        h_state = jnp.zeros((B, Chid, H, W), dtype)
        c_state = jnp.zeros((B, Chid, H, W), dtype)
    else:
        h_state, c_state = hidden_state

    matmul_dtype = jnp.bfloat16 if use_bf16_matmul else dtype

    # ---- boundary glue (plain JAX): NCHW->NHWC, concat, pad (raw size) ----
    # TODO(synk): for a recurrent scan over timesteps, keep x/h/c in NHWC row
    # layout across steps (drop these transposes), reshape the weights once,
    # and alias the cell state in place via input_output_aliases.
    x_nhwc = jnp.transpose(x_nchw, (0, 2, 3, 1)).astype(matmul_dtype)
    h_nhwc = jnp.transpose(h_state, (0, 2, 3, 1)).astype(matmul_dtype)
    combined = jnp.concatenate([x_nhwc, h_nhwc], axis=-1)          # (B,H,W,Cin)
    combined_pad = jnp.pad(combined,
                           ((0, 0), (pad, pad), (pad, pad), (0, 0)))
    c_rows = jnp.transpose(c_state, (0, 2, 3, 1)).reshape(B, H * W, Chid)

    # OIHW -> (kh, kw, cin, cout) -> (K*K*Cin, Cout); matches the in-kernel
    # patch ordering; output channels keep the [i|f|o|g] order.
    w2d = jnp.transpose(weight_oihw, (2, 3, 1, 0)).reshape(K * K * Cin, Cout)
    w2d = w2d.astype(matmul_dtype)
    b2d = bias.reshape(1, Cout).astype(jnp.float32)

    Hp, Wp = H + 2 * pad, W + 2 * pad
    KKC = K * K * Cin

    # Row tiling: ~target_tile_rows rows per step (grid of 4 at the demo
    # shapes -> >= 2 steps per TensorCore on v7x; on single-TC v5e/v6e the
    # extra ~0.35 us/step is noise).  Falls back to a full image per step.
    th = _pick_row_tile(H, W, target_tile_rows)
    tile_m = th * W

    kernel = functools.partial(_convlstm_kernel, K=K, W=W, th=th, chid=Chid)

    out_bytes = 2 * B * H * W * Chid * jnp.dtype(dtype).itemsize
    bytes_accessed = int(combined_pad.size * combined_pad.dtype.itemsize
                         + w2d.size * w2d.dtype.itemsize
                         + b2d.size * 4
                         + c_rows.size * c_rows.dtype.itemsize
                         + out_bytes)
    cost = pl.CostEstimate(flops=2 * B * H * W * KKC * Cout,
                           transcendentals=5 * B * H * W * Chid,
                           bytes_accessed=bytes_accessed)

    # TODO(synk): for very large H*W the per-batch padded image may not fit
    # VMEM; switch comb to memory_space=pl.ANY with a manual 1-row-halo DMA.
    h_rows, c_rows_out = pl.pallas_call(
        kernel,
        out_shape=(jax.ShapeDtypeStruct((B, H * W, Chid), dtype),
                   jax.ShapeDtypeStruct((B, H * W, Chid), dtype)),
        grid_spec=pltpu.PrefetchScalarGridSpec(
            num_scalar_prefetch=0,
            grid=(B, H // th),
            in_specs=[
                # padded [x|h] image, DMA'd once per batch element (block index
                # does not change along the row-block axis)
                pl.BlockSpec((1, Hp, Wp, Cin), lambda b, r: (b, 0, 0, 0)),
                pl.BlockSpec((KKC, Cout), lambda b, r: (0, 0)),   # weights resident
                pl.BlockSpec((1, Cout), lambda b, r: (0, 0)),     # bias resident
                pl.BlockSpec((1, tile_m, Chid), lambda b, r: (b, r, 0)),
            ],
            out_specs=[
                pl.BlockSpec((1, tile_m, Chid), lambda b, r: (b, r, 0)),
                pl.BlockSpec((1, tile_m, Chid), lambda b, r: (b, r, 0)),
            ],
            scratch_shapes=[pltpu.VMEM((tile_m, KKC), matmul_dtype)],
        ),
        compiler_params=pltpu.CompilerParams(
            dimension_semantics=("parallel", "parallel")),
        cost_estimate=cost,
    )(combined_pad, w2d, b2d, c_rows)

    # rows -> NHWC -> NCHW (free reshape + one transpose each)
    h_next = jnp.transpose(h_rows.reshape(B, H, W, Chid), (0, 3, 1, 2))
    c_next = jnp.transpose(c_rows_out.reshape(B, H, W, Chid), (0, 3, 1, 2))
    return h_next, c_next


def _reference(x_nchw, weight_oihw, bias, hidden_state=None):
    """Pure-JAX reference (mirrors the PyTorch forward)."""
    B, _, H, W = x_nchw.shape
    Cout = weight_oihw.shape[0]
    Chid = Cout // 4
    K = weight_oihw.shape[2]
    if hidden_state is None:
        h = jnp.zeros((B, Chid, H, W), x_nchw.dtype)
        c = jnp.zeros((B, Chid, H, W), x_nchw.dtype)
    else:
        h, c = hidden_state
    combined = jnp.concatenate([x_nchw, h], axis=1)
    conv = jax.lax.conv_general_dilated(
        combined, weight_oihw, window_strides=(1, 1),
        padding=[(K // 2, K // 2), (K // 2, K // 2)],
        dimension_numbers=("NCHW", "OIHW", "NCHW"))
    conv = conv + bias.reshape(1, Cout, 1, 1)
    cc_i, cc_f, cc_o, cc_g = jnp.split(conv, 4, axis=1)
    i = jax.nn.sigmoid(cc_i)
    f = jax.nn.sigmoid(cc_f)
    o = jax.nn.sigmoid(cc_o)
    g = jnp.tanh(cc_g)
    c_next = f * c + i * g
    h_next = o * jnp.tanh(c_next)
    return h_next, c_next


if __name__ == "__main__":
    # Small, deterministic config: batch=2, input_channels=4, hidden=32,
    # kernel_size=3, spatial 16x16.
    B, Cin_x, H, W = 2, 4, 16, 16
    Chid, K = 32, 3
    Cin = Cin_x + Chid
    Cout = 4 * Chid

    key = jax.random.PRNGKey(0)
    kx, kh, kc, kw, kb = jax.random.split(key, 5)

    x = jax.random.normal(kx, (B, Cin_x, H, W), jnp.float32)
    h0 = jax.random.normal(kh, (B, Chid, H, W), jnp.float32)
    c0 = jax.random.normal(kc, (B, Chid, H, W), jnp.float32)

    # PyTorch-style uniform(-1/sqrt(fan_in), 1/sqrt(fan_in)) init, deterministic.
    fan_in = Cin * K * K
    bound = 1.0 / (fan_in ** 0.5)
    weight = jax.random.uniform(kw, (Cout, Cin, K, K), jnp.float32, -bound, bound)
    bias = jax.random.uniform(kb, (Cout,), jnp.float32, -bound, bound)

    h_ref, c_ref = _reference(x, weight, bias, (h0, c0))

    # Exact-precision path (f32 matmul), tight tolerance.
    h_f32, c_f32 = conv_lstm_cell(x, weight, bias, (h0, c0),
                                  use_bf16_matmul=False)
    jax.block_until_ready((h_f32, c_f32))
    assert jnp.allclose(h_f32, h_ref, atol=1e-5, rtol=1e-5)
    assert jnp.allclose(c_f32, c_ref, atol=1e-5, rtol=1e-5)

    # Default fast path (bf16 MXU inputs, f32 accumulation), looser tolerance.
    h_bf, c_bf = conv_lstm_cell(x, weight, bias, (h0, c0))
    jax.block_until_ready((h_bf, c_bf))
    assert jnp.allclose(h_bf, h_ref, atol=2e-2, rtol=2e-2)
    assert jnp.allclose(c_bf, c_ref, atol=2e-2, rtol=2e-2)

    # Also exercise the hidden_state=None path (zero states), default path.
    h2, c2 = conv_lstm_cell(x, weight, bias, None)
    jax.block_until_ready((h2, c2))
    h2_ref, c2_ref = _reference(x, weight, bias, None)
    assert jnp.allclose(h2, h2_ref, atol=2e-2, rtol=2e-2)
    assert jnp.allclose(c2, c2_ref, atol=2e-2, rtol=2e-2)

    print("KERNEL_OK")
</pallas_src>

<mosaic_0001>
module attributes {stable_mosaic.version = 11 : i64} {
  func.func @_convlstm_kernel(%arg0: i32, %arg1: i32, %arg2: memref<1x18x18x36xf32, #tpu.memory_space<vmem>>, %arg3: memref<324x128xf32, #tpu.memory_space<vmem>>, %arg4: memref<1x128xf32, #tpu.memory_space<vmem>>, %arg5: memref<1x128x32xf32, #tpu.memory_space<vmem>>, %arg6: memref<1x128x32xf32, #tpu.memory_space<vmem>>, %arg7: memref<1x128x32xf32, #tpu.memory_space<vmem>>, %arg8: memref<128x324xf32, #tpu.memory_space<vmem>>) attributes {dimension_semantics = [#tpu.dimension_semantics<parallel>, #tpu.dimension_semantics<parallel>], iteration_bounds = array<i64: 2, 2>, scalar_prefetch = 0 : i64, scratch_operands = 1 : i64, tpu.core_type = #tpu.core_type<tc>, window_params = [{transform_indices = @transform_0, window_bounds = array<i64: 1, 18, 18, 36>}, {pipeline_mode = #tpu.pipeline_mode<synchronous>, transform_indices = @transform_1, window_bounds = array<i64: 324, 128>}, {pipeline_mode = #tpu.pipeline_mode<synchronous>, transform_indices = @transform_2, window_bounds = array<i64: 1, 128>}, {transform_indices = @transform_3, window_bounds = array<i64: 1, 128, 32>}, {transform_indices = @transform_4, window_bounds = array<i64: 1, 128, 32>}, {transform_indices = @transform_5, window_bounds = array<i64: 1, 128, 32>}]} {
    %c8_i32 = arith.constant 8 : i32
    %0 = arith.muli %arg1, %c8_i32 : i32
    %c0_i32 = arith.constant 0 : i32
    %1 = arith.addi %0, %c0_i32 : i32
    %c0 = arith.constant 0 : index
    %2 = arith.index_cast %1 : i32 to index
    %c0_0 = arith.constant 0 : index
    %c0_1 = arith.constant 0 : index
    %3 = vector.load %arg2[%c0, %2, %c0_0, %c0_1] : memref<1x18x18x36xf32, #tpu.memory_space<vmem>>, vector<1x8x16x36xf32>
    %4 = vector.shape_cast %3 : vector<1x8x16x36xf32> to vector<8x16x36xf32>
    %5 = vector.shape_cast %4 : vector<8x16x36xf32> to vector<128x36xf32>
    %c0_2 = arith.constant 0 : index
    %c0_3 = arith.constant 0 : index
    %6 = vector.load %arg8[%c0_2, %c0_3] : memref<128x324xf32, #tpu.memory_space<vmem>>, vector<128x36xf32>
    tpu.vector_store %arg8[%c0_2, %c0_3], %5 {strides = array<i32>} : memref<128x324xf32, #tpu.memory_space<vmem>>, vector<128x36xf32>,
    %c0_i32_4 = arith.constant 0 : i32
    %7 = arith.addi %0, %c0_i32_4 : i32
    %c0_5 = arith.constant 0 : index
    %8 = arith.index_cast %7 : i32 to index
    %c1 = arith.constant 1 : index
    %c0_6 = arith.constant 0 : index
    %9 = vector.load %arg2[%c0_5, %8, %c1, %c0_6] : memref<1x18x18x36xf32, #tpu.memory_space<vmem>>, vector<1x8x16x36xf32>
    %10 = vector.shape_cast %9 : vector<1x8x16x36xf32> to vector<8x16x36xf32>
    %11 = vector.shape_cast %10 : vector<8x16x36xf32> to vector<128x36xf32>
    %c0_7 = arith.constant 0 : index
    %c36 = arith.constant 36 : index
    %12 = vector.load %arg8[%c0_7, %c36] : memref<128x324xf32, #tpu.memory_space<vmem>>, vector<128x36xf32>
    tpu.vector_store %arg8[%c0_7, %c36], %11 {strides = array<i32>} : memref<128x324xf32, #tpu.memory_space<vmem>>, vector<128x36xf32>,
    %c0_i32_8 = arith.constant 0 : i32
    %13 = arith.addi %0, %c0_i32_8 : i32
    %c0_9 = arith.constant 0 : index
    %14 = arith.index_cast %13 : i32 to index
    %c2 = arith.constant 2 : index
    %c0_10 = arith.constant 0 : index
    %15 = vector.load %arg2[%c0_9, %14, %c2, %c0_10] : memref<1x18x18x36xf32, #tpu.memory_space<vmem>>, vector<1x8x16x36xf32>
    %16 = vector.shape_cast %15 : vector<1x8x16x36xf32> to vector<8x16x36xf32>
    %17 = vector.shape_cast %16 : vector<8x16x36xf32> to vector<128x36xf32>
    %c0_11 = arith.constant 0 : index
    %c72 = arith.constant 72 : index
    %18 = vector.load %arg8[%c0_11, %c72] : memref<128x324xf32, #tpu.memory_space<vmem>>, vector<128x36xf32>
    tpu.vector_store %arg8[%c0_11, %c72], %17 {strides = array<i32>} : memref<128x324xf32, #tpu.memory_space<vmem>>, vector<128x36xf32>,
    %c1_i32 = arith.constant 1 : i32
    %19 = arith.addi %0, %c1_i32 : i32
    %c0_12 = arith.constant 0 : index
    %20 = arith.index_cast %19 : i32 to index
    %c0_13 = arith.constant 0 : index
    %c0_14 = arith.constant 0 : index
    %21 = vector.load %arg2[%c0_12, %20, %c0_13, %c0_14] : memref<1x18x18x36xf32, #tpu.memory_space<vmem>>, vector<1x8x16x36xf32>
    %22 = vector.shape_cast %21 : vector<1x8x16x36xf32> to vector<8x16x36xf32>
    %23 = vector.shape_cast %22 : vector<8x16x36xf32> to vector<128x36xf32>
    %c0_15 = arith.constant 0 : index
    %c108 = arith.constant 108 : index
    %24 = vector.load %arg8[%c0_15, %c108] : memref<128x324xf32, #tpu.memory_space<vmem>>, vector<128x36xf32>
    tpu.vector_store %arg8[%c0_15, %c108], %23 {strides = array<i32>} : memref<128x324xf32, #tpu.memory_space<vmem>>, vector<128x36xf32>,
    %c1_i32_16 = arith.constant 1 : i32
    %25 = arith.addi %0, %c1_i32_16 : i32
    %c0_17 = arith.constant 0 : index
    %26 = arith.index_cast %25 : i32 to index
    %c1_18 = arith.constant 1 : index
    %c0_19 = arith.constant 0 : index
    %27 = vector.load %arg2[%c0_17, %26, %c1_18, %c0_19] : memref<1x18x18x36xf32, #tpu.memory_space<vmem>>, vector<1x8x16x36xf32>
    %28 = vector.shape_cast %27 : vector<1x8x16x36xf32> to vector<8x16x36xf32>
    %29 = vector.shape_cast %28 : vector<8x16x36xf32> to vector<128x36xf32>
    %c0_20 = arith.constant 0 : index
    %c144 = arith.constant 144 : index
    %30 = vector.load %arg8[%c0_20, %c144] : memref<128x324xf32, #tpu.memory_space<vmem>>, vector<128x36xf32>
    tpu.vector_store %arg8[%c0_20, %c144], %29 {strides = array<i32>} : memref<128x324xf32, #tpu.memory_space<vmem>>, vector<128x36xf32>,
    %c1_i32_21 = arith.constant 1 : i32
    %31 = arith.addi %0, %c1_i32_21 : i32
    %c0_22 = arith.constant 0 : index
    %32 = arith.index_cast %31 : i32 to index
    %c2_23 = arith.constant 2 : index
    %c0_24 = arith.constant 0 : index
    %33 = vector.load %arg2[%c0_22, %32, %c2_23, %c0_24] : memref<1x18x18x36xf32, #tpu.memory_space<vmem>>, vector<1x8x16x36xf32>
    %34 = vector.shape_cast %33 : vector<1x8x16x36xf32> to vector<8x16x36xf32>
    %35 = vector.shape_cast %34 : vector<8x16x36xf32> to vector<128x36xf32>
    %c0_25 = arith.constant 0 : index
    %c180 = arith.constant 180 : index
    %36 = vector.load %arg8[%c0_25, %c180] : memref<128x324xf32, #tpu.memory_space<vmem>>, vector<128x36xf32>
    tpu.vector_store %arg8[%c0_25, %c180], %35 {strides = array<i32>} : memref<128x324xf32, #tpu.memory_space<vmem>>, vector<128x36xf32>,
    %c2_i32 = arith.constant 2 : i32
    %37 = arith.addi %0, %c2_i32 : i32
    %c0_26 = arith.constant 0 : index
    %38 = arith.index_cast %37 : i32 to index
    %c0_27 = arith.constant 0 : index
    %c0_28 = arith.constant 0 : index
    %39 = vector.load %arg2[%c0_26, %38, %c0_27, %c0_28] : memref<1x18x18x36xf32, #tpu.memory_space<vmem>>, vector<1x8x16x36xf32>
    %40 = vector.shape_cast %39 : vector<1x8x16x36xf32> to vector<8x16x36xf32>
    %41 = vector.shape_cast %40 : vector<8x16x36xf32> to vector<128x36xf32>
    %c0_29 = arith.constant 0 : index
    %c216 = arith.constant 216 : index
    %42 = vector.load %arg8[%c0_29, %c216] : memref<128x324xf32, #tpu.memory_space<vmem>>, vector<128x36xf32>
    tpu.vector_store %arg8[%c0_29, %c216], %41 {strides = array<i32>} : memref<128x324xf32, #tpu.memory_space<vmem>>, vector<128x36xf32>,
    %c2_i32_30 = arith.constant 2 : i32
    %43 = arith.addi %0, %c2_i32_30 : i32
    %c0_31 = arith.constant 0 : index
    %44 = arith.index_cast %43 : i32 to index
    %c1_32 = arith.constant 1 : index
    %c0_33 = arith.constant 0 : index
    %45 = vector.load %arg2[%c0_31, %44, %c1_32, %c0_33] : memref<1x18x18x36xf32, #tpu.memory_space<vmem>>, vector<1x8x16x36xf32>
    %46 = vector.shape_cast %45 : vector<1x8x16x36xf32> to vector<8x16x36xf32>
    %47 = vector.shape_cast %46 : vector<8x16x36xf32> to vector<128x36xf32>
    %c0_34 = arith.constant 0 : index
    %c252 = arith.constant 252 : index
    %48 = vector.load %arg8[%c0_34, %c252] : memref<128x324xf32, #tpu.memory_space<vmem>>, vector<128x36xf32>
    tpu.vector_store %arg8[%c0_34, %c252], %47 {strides = array<i32>} : memref<128x324xf32, #tpu.memory_space<vmem>>, vector<128x36xf32>,
    %c2_i32_35 = arith.constant 2 : i32
    %49 = arith.addi %0, %c2_i32_35 : i32
    %c0_36 = arith.constant 0 : index
    %50 = arith.index_cast %49 : i32 to index
    %c2_37 = arith.constant 2 : index
    %c0_38 = arith.constant 0 : index
    %51 = vector.load %arg2[%c0_36, %50, %c2_37, %c0_38] : memref<1x18x18x36xf32, #tpu.memory_space<vmem>>, vector<1x8x16x36xf32>
    %52 = vector.shape_cast %51 : vector<1x8x16x36xf32> to vector<8x16x36xf32>
    %53 = vector.shape_cast %52 : vector<8x16x36xf32> to vector<128x36xf32>
    %c0_39 = arith.constant 0 : index
    %c288 = arith.constant 288 : index
    %54 = vector.load %arg8[%c0_39, %c288] : memref<128x324xf32, #tpu.memory_space<vmem>>, vector<128x36xf32>
    tpu.vector_store %arg8[%c0_39, %c288], %53 {strides = array<i32>} : memref<128x324xf32, #tpu.memory_space<vmem>>, vector<128x36xf32>,
    %c0_40 = arith.constant 0 : index
    %c0_41 = arith.constant 0 : index
    %55 = vector.load %arg8[%c0_40, %c0_41] : memref<128x324xf32, #tpu.memory_space<vmem>>, vector<128x324xf32>
    %c0_42 = arith.constant 0 : index
    %c0_43 = arith.constant 0 : index
    %56 = vector.load %arg3[%c0_42, %c0_43] : memref<324x128xf32, #tpu.memory_space<vmem>>, vector<324x128xf32>
    %cst = arith.constant dense<0.000000e+00> : vector<128x128xf32>
    %57 = tpu.matmul %55, %56, %cst {dimension_numbers = #tpu.dot_dimension_numbers<[1], [0], [0], [1], [0, 0, 1, 1], [], []>} : vector<128x324xf32>, vector<324x128xf32>, vector<128x128xf32> -> vector<128x128xf32>
    %c0_44 = arith.constant 0 : index
    %c0_45 = arith.constant 0 : index
    %58 = vector.load %arg4[%c0_44, %c0_45] : memref<1x128xf32, #tpu.memory_space<vmem>>, vector<1x128xf32>
    %59 = vector.broadcast %58 : vector<1x128xf32> to vector<128x128xf32>
    %60 = arith.addf %57, %59 : vector<128x128xf32>
    %61 = vector.extract_strided_slice %60 {offsets = [0, 0], sizes = [128, 96], strides = [1, 1]} : vector<128x128xf32> to vector<128x96xf32>
    %62 = arith.negf %61 : vector<128x96xf32>
    %63 = math.exp %62 : vector<128x96xf32>
    %cst_46 = arith.constant 1.000000e+00 : f32
    %64 = vector.broadcast %cst_46 : f32 to vector<128x96xf32>
    %65 = arith.addf %64, %63 : vector<128x96xf32>
    %66 = arith.divf %64, %65 : vector<128x96xf32>
    %67 = vector.extract_strided_slice %60 {offsets = [0, 96], sizes = [128, 32], strides = [1, 1]} : vector<128x128xf32> to vector<128x32xf32>
    %68 = math.tanh %67 : vector<128x32xf32>
    %69 = vector.extract_strided_slice %66 {offsets = [0, 0], sizes = [128, 32], strides = [1, 1]} : vector<128x96xf32> to vector<128x32xf32>
    %70 = vector.extract_strided_slice %66 {offsets = [0, 32], sizes = [128, 32], strides = [1, 1]} : vector<128x96xf32> to vector<128x32xf32>
    %71 = vector.extract_strided_slice %66 {offsets = [0, 64], sizes = [128, 32], strides = [1, 1]} : vector<128x96xf32> to vector<128x32xf32>
    %c0_47 = arith.constant 0 : index
    %c0_48 = arith.constant 0 : index
    %c0_49 = arith.constant 0 : index
    %72 = vector.load %arg5[%c0_47, %c0_48, %c0_49] : memref<1x128x32xf32, #tpu.memory_space<vmem>>, vector<1x128x32xf32>
    %73 = vector.shape_cast %72 : vector<1x128x32xf32> to vector<128x32xf32>
    %74 = arith.mulf %70, %73 : vector<128x32xf32>
    %75 = arith.mulf %69, %68 : vector<128x32xf32>
    %76 = arith.addf %74, %75 : vector<128x32xf32>
    %77 = math.tanh %76 : vector<128x32xf32>
    %78 = arith.mulf %71, %77 : vector<128x32xf32>
    %c0_50 = arith.constant 0 : index
    %c0_51 = arith.constant 0 : index
    %c0_52 = arith.constant 0 : index
    %79 = vector.load %arg6[%c0_50, %c0_51, %c0_52] : memref<1x128x32xf32, #tpu.memory_space<vmem>>, vector<1x128x32xf32>
    %80 = vector.shape_cast %79 : vector<1x128x32xf32> to vector<128x32xf32>
    %81 = vector.shape_cast %78 : vector<128x32xf32> to vector<1x128x32xf32>
    tpu.vector_store %arg6[%c0_50, %c0_51, %c0_52], %81 {strides = array<i32>} : memref<1x128x32xf32, #tpu.memory_space<vmem>>, vector<1x128x32xf32>,
    %c0_53 = arith.constant 0 : index
    %c0_54 = arith.constant 0 : index
    %c0_55 = arith.constant 0 : index
    %82 = vector.load %arg7[%c0_53, %c0_54, %c0_55] : memref<1x128x32xf32, #tpu.memory_space<vmem>>, vector<1x128x32xf32>
    %83 = vector.shape_cast %82 : vector<1x128x32xf32> to vector<128x32xf32>
    %84 = vector.shape_cast %76 : vector<128x32xf32> to vector<1x128x32xf32>
    tpu.vector_store %arg7[%c0_53, %c0_54, %c0_55], %84 {strides = array<i32>} : memref<1x128x32xf32, #tpu.memory_space<vmem>>, vector<1x128x32xf32>,
    return
  }
  func.func @transform_0(%arg0: i32, %arg1: i32) -> (i32, i32, i32, i32) {
    %c0_i32 = arith.constant 0 : i32
    %c0_i32_0 = arith.constant 0 : i32
    %c0_i32_1 = arith.constant 0 : i32
    %c0_i32_2 = arith.constant 0 : i32
    return %arg0, %c0_i32, %c0_i32_0, %c0_i32_1 : i32, i32, i32, i32
  }
  func.func @transform_1(%arg0: i32, %arg1: i32) -> (i32, i32) {
    %c0_i32 = arith.constant 0 : i32
    %c0_i32_0 = arith.constant 0 : i32
    %c0_i32_1 = arith.constant 0 : i32
    return %c0_i32, %c0_i32_0 : i32, i32
  }
  func.func @transform_2(%arg0: i32, %arg1: i32) -> (i32, i32) {
    %c0_i32 = arith.constant 0 : i32
    %c0_i32_0 = arith.constant 0 : i32
    %c0_i32_1 = arith.constant 0 : i32
    return %c0_i32, %c0_i32_0 : i32, i32
  }
  func.func @transform_3(%arg0: i32, %arg1: i32) -> (i32, i32, i32) {
    %c0_i32 = arith.constant 0 : i32
    %c0_i32_0 = arith.constant 0 : i32
    return %arg0, %arg1, %c0_i32 : i32, i32, i32
  }
  func.func @transform_4(%arg0: i32, %arg1: i32) -> (i32, i32, i32) {
    %c0_i32 = arith.constant 0 : i32
    %c0_i32_0 = arith.constant 0 : i32
    return %arg0, %arg1, %c0_i32 : i32, i32, i32
  }
  func.func @transform_5(%arg0: i32, %arg1: i32) -> (i32, i32, i32) {
    %c0_i32 = arith.constant 0 : i32
    %c0_i32_0 = arith.constant 0 : i32
    return %arg0, %arg1, %c0_i32 : i32, i32, i32
  }
}

</mosaic_0001>

<bundles_post_ra>
// kernel: tpu_custom_call.1
= control target key start
LH: loop header
LB: loop body
LE: loop exit
PB: predicated region body
PF: predicated region fallthrough
CT: control target
= control target key end

     0   :  { %s2948_s18 = smov 0   ;;  %s2950_s19 = smov 0   ;;  %s4464_s0 = inlined_call_operand.vmem [shape: f32[2,18,18,36], index: 0, kind: input, shape index: {}]   ;;  %s4465_s1 = inlined_call_operand.vmem [shape: f32[324,128], index: 1, kind: input, shape index: {}]   ;;  %s4466_s2 = inlined_call_operand.vmem [shape: f32[1,128], index: 2, kind: input, shape index: {}]   ;;  %s4467_s3 = inlined_call_operand.vmem [shape: f32[2,256,32], index: 3, kind: input, shape index: {}]   ;;  %s4468_s4 = inlined_call_operand.vmem [shape: f32[2,256,32], index: 4, kind: output, shape index: {0}]   ;;  %s4469_s5 = inlined_call_operand.vmem [shape: f32[2,256,32], index: 5, kind: output, shape index: {1}]  }
   0x1   :  { %s2952_s20 = smov 0   ;;  %s2954_s21 = smov 0  }
   0x2   :  { %s2956_s22 = smov 0  }
   0x3 LB: > { %s25_s23 = sadd.s32 1, %s2898_s20  ;;  %s28_s24 = sadd.s32 1, %s2902_s21  ;;  %s2906_s22 = sphi %s2956_s22, %s16_s22   ;;  %s2902_s21 = sphi %s2954_s21, %s4491_s21   ;;  %s2898_s20 = sphi %s2952_s20, %s4490_s20   ;;  %s2894_s19 = sphi %s2950_s19, %s4489_s19   ;;  %s2890_s18 = sphi %s2948_s18, %s4488_s18  }
   0x4   : > { %p26_p0 = scmp.ge.s32.totalorder %s25_s23, 2  ;;  %p2499_p1 = scmp.ge.s32.totalorder %s2906_s22, 1 }
   0x5   : > { %p223_p2 = scmp.lt.s32.totalorder %s2906_s22, 5 }
   0x6   : > { %s4493_s23 = smov (%p26_p0, %s25_s23), 0  ;;  %s4495_s24 = smov (!%p26_p0, %s28_s24), %s2902_s21 }
   0x7   : > { %p224_p3 = pnand %p2499_p1, %p223_p2  ;;  %p30_p4 = scmp.ge.s32.totalorder %s4495_s24, 2 }
   0x8   : > { %p273_p5 = scmp.lt.s32.totalorder (!%p224_p3), %s2894_s19, 1  ;;  %s2511_s25 = smul.u32 (!%p224_p3), 192, %s2890_s18 }
   0x9   : > { %s4497_s24 = smov (%p30_p4, %s4495_s24), 0  ;;  %227 = sbr.rel (%p224_p3) target bundleno = 1093 (0x445), region = 36 }
   0xa   : > { %s2908_s6 = smov (!%p224_p3), 36   ;;  %s2909_s7 = smov (!%p224_p3), 72  }
   0xb   : > { %s2910_s8 = smov (!%p224_p3), 108   ;;  %s2911_s9 = smov (!%p224_p3), 16  }
   0xc   : > { %s2914_s11 = smov (!%p224_p3), 32   ;;  %s2915_s12 = smov (!%p224_p3), 88  }
   0xd   : > { %s2916_s14 = smov (!%p224_p3), 96  }
   0xe   : > { %s4499_s19 = smov (!%p273_p5, %s2894_s19), 1  ;;  %vm327_vm0 = vcmask 293888   ;;  %vm424_vm1 = vcmask 589088   ;;  %vm521_vm2 = vcmask 884288   ;;  %vm621_vm3 = vcmask 1048416  }
   0xf   : > { %s2688_s26 = smul.u32 432, %s4499_s19  ;;  %vm623_vm4 = vcmask 130048   ;;  %vm735_vm5 = vcmask 425088   ;;  %vm832_vm6 = vcmask 720288   ;;  %vm1302_vm7 = vcmask 1043456  }
  0x10   : > { %vm1031_vm8 = vcmask 261120   ;;  %vm1143_vm9 = vcmask 556288   ;;  %vm1253_vm10 = vcmask 556032   ;;  %vm932_vm11 = vcmask 1015488  }
  0x11   : > { %s277_s29 = scalar_lea.vmem %s4464_s0, %s2688_s26  ;;  %vm1029_vm12 = vcmask 1048544  }
  0x12   : > { %s2987_s30 = scalar_lea.vmem %s277_s29, %s2511_s25  ;;  %s2917_s25 = smov 64  }
  0x13   : > { %v2990_v0 = vld [vmem:[%s2987_s30 + $0x19] sm:$0xff]  ;;  %v344_v1 = vld [vmem:[%s2987_s30 + $0x1] sm:$0xff]  ;;  %v2997_v2 = vld [vmem:[%s2987_s30 + $0x31] sm:$0xff] }
  0x14   : > { %380 = vrot.lane.b32.xlu1 %v2990_v0, %s2908_s6  ;;  %376 = vrot.lane.b32.xlu0 %v344_v1, %s2908_s6  ;;  %v3002_v3 = vld [vmem:[%s2987_s30 + $0x21] sm:$0xff]  ;;  %v345_v4 = vld [vmem:[%s2987_s30 + $0x9] sm:$0xff] }
  0x15   : > { %384 = vrot.lane.b32.xlu2 %v2997_v2, %s2908_s6  ;;  %v3006_v5 = vld [vmem:[%s2987_s30 + $0x39] sm:$0xff]  ;;  %v3014_v6 = vld [vmem:[%s2987_s30 + $0x51] sm:$0xff]  ;;  %v3017_v7 = vld [vmem:[%s2987_s30 + $0x49] sm:$0xff] }
  0x16   : > { %v3020_v8 = vld [vmem:[%s2987_s30 + $0x61] sm:$0xff]  ;;  %v3029_v9 = vld [vmem:[%s2987_s30 + $0x79] sm:$0xff]  ;;  %v3032_v10 = vld [vmem:[%s2987_s30 + $0x69] sm:$0xff] }
  0x17   : > { %v3035_v11 = vld [vmem:[%s2987_s30 + $0x81] sm:$0xff]  ;;  %v3044_v12 = vld [vmem:[%s2987_s30 + $0x99] sm:$0xff]  ;;  %v3047_v13 = vld [vmem:[%s2987_s30 + $0x91] sm:$0xff] }
  0x18   : > { %v3050_v14 = vld [vmem:[%s2987_s30 + $0xa9] sm:$0xff]  ;;  %v3060_v16 = vld [vmem:[%s2987_s30 + $0xb1] sm:$0xff]  ;;  %v3071_v19 = vld [vmem:[%s2987_s30 + $0x1a] sm:$0xff] }
  0x19   : > { %v441_v15 = vld [vmem:[%s2987_s30 + $0x2] sm:$0xff]  ;;  %v442_v17 = vld [vmem:[%s2987_s30 + $0xa] sm:$0xff]  ;;  %v3074_v20 = vld [vmem:[%s2987_s30 + $0x32] sm:$0xff] }
  0x1a   : > { %v3068_v18 = vld [vmem:[%s2987_s30 + $0x22] sm:$0xff]  ;;  %v3083_v21 = vld [vmem:[%s2987_s30 + $0x4a] sm:$0xff]  ;;  %v3086_v22 = vld [vmem:[%s2987_s30 + $0x3a] sm:$0xff] }
  0x1b   : > { %v3089_v23 = vld [vmem:[%s2987_s30 + $0x52] sm:$0xff]  ;;  %v3098_v24 = vld [vmem:[%s2987_s30 + $0x6a] sm:$0xff]  ;;  %v3101_v25 = vld [vmem:[%s2987_s30 + $0x62] sm:$0xff] }
  0x1c   : > { %382 = vrot.lane.b32.xlu1 %v3002_v3, %s2908_s6  ;;  %378 = vrot.lane.b32.xlu0 %v345_v4, %s2908_s6  ;;  %v3104_v26 = vld [vmem:[%s2987_s30 + $0x7a] sm:$0xff]  ;;  %v3113_v27 = vld [vmem:[%s2987_s30 + $0x92] sm:$0xff] }
  0x1d   : > { %386 = vrot.lane.b32.xlu2 %v3006_v5, %s2908_s6  ;;  %v3116_v28 = vld [vmem:[%s2987_s30 + $0x82] sm:$0xff]  ;;  %v3119_v29 = vld [vmem:[%s2987_s30 + $0x9a] sm:$0xff]  ;;  %v3128_v30 = vld [vmem:[%s2987_s30 + $0xb2] sm:$0xff] }
  0x1e   : > { %v3131_v31 = vld [vmem:[%s2987_s30 + $0xaa] sm:$0xff]  ;;  %v2514_v32 = vld [vmem:[%s2987_s30 + $0x18] sm:$0xff]  ;;  %v311_v34 = vld [vmem:[%s2987_s30] sm:$0xff] }
  0x1f   : > { %v3139_v33 = vld [vmem:[%s2987_s30 + $0x30] sm:$0xff]  ;;  %330 = vst.msk [vmem:[#allocation2 + $0x30] sm:$0xff] %vm327_vm0, %v2514_v32  ;;  %v3147_v35 = vld [vmem:[%s2987_s30 + $0x38] sm:$0xff]  ;;  %v2515_v36 = vld [vmem:[%s2987_s30 + $0x20] sm:$0xff] }
  0x20   : > { %332 = vst.msk [vmem:[#allocation2 + $0x60] sm:$0xff] %vm327_vm0, %v3139_v33  ;;  %v3154_v37 = vld [vmem:[%s2987_s30 + $0x60] sm:$0xff]  ;;  %v3158_v38 = vld [vmem:[%s2987_s30 + $0x50] sm:$0xff]  ;;  %v3163_v39 = vld [vmem:[%s2987_s30 + $0x48] sm:$0xff] }
  0x21   : > { %328 = vst.msk [vmem:[#allocation2] sm:$0xff] %vm327_vm0, %v311_v34  ;;  %v3171_v40 = vld [vmem:[%s2987_s30 + $0x78] sm:$0xff]  ;;  %v3176_v41 = vld [vmem:[%s2987_s30 + $0x68] sm:$0xff]  ;;  %v3190_v45 = vld [vmem:[%s2987_s30 + $0x80] sm:$0xff] }
  0x22   : > { %333 = vst.msk [vmem:[#allocation2 + $0x78] sm:$0xff] %vm327_vm0, %v3147_v35  ;;  %v312_v42 = vld [vmem:[%s2987_s30 + $0x8] sm:$0xff]  ;;  %v2525_v43 = vld [vmem:[%s2987_s30 + $0x98] sm:$0xff]  ;;  %v3193_v46 = vld [vmem:[%s2987_s30 + $0x90] sm:$0xff] }
  0x23   : > { %331 = vst.msk [vmem:[#allocation2 + $0x48] sm:$0xff] %vm327_vm0, %v2515_v36  ;;  %v2527_v47 = vld [vmem:[%s2987_s30 + $0xb0] sm:$0xff]  ;;  %v3209_v49 = vld [vmem:[%s2987_s30 + $0xa8] sm:$0xff]  ;;  %v3228_v54 = vld [vmem:[%s2987_s30 + $0xc0] sm:$0xff] }
  0x24   : > { %390 = vrot.lane.b32.xlu1 %v3014_v6, %s2908_s6  ;;  %388 = vrot.lane.b32.xlu0 %v3017_v7, %s2908_s6  ;;  %336 = vst.msk [vmem:[#allocation2 + $0xc0] sm:$0xff] %vm327_vm0, %v3154_v37  ;;  %v3232_v55 = vld [vmem:[%s2987_s30 + $0xc8] sm:$0xff]  ;;  %v1223_v1 = vld [vmem:[%s4465_s1 + $0x78] sm:$0xff] }
  0x25   : > { %392 = vrot.lane.b32.xlu2 %v3020_v8, %s2908_s6  ;;  %335 = vst.msk [vmem:[#allocation2 + $0xa8] sm:$0xff] %vm327_vm0, %v3158_v38  ;;  %1306 = vmatpush.msra.mxu0 %v1223_v1  ;;  %v1221_v4 = vld [vmem:[%s4465_s1 + $0x68] sm:$0xff] }
  0x26   : > { %334 = vst.msk [vmem:[#allocation2 + $0x90] sm:$0xff] %vm327_vm0, %v3163_v39  ;;  %2647 = vmatpush.msra.mxu3 %v1223_v1  ;;  %v1208_v1 = vld [vmem:[%s4465_s1] sm:$0xff] }
  0x27   : > { %338 = vst.msk [vmem:[#allocation2 + $0xf0] sm:$0xff] %vm327_vm0, %v3171_v40 }
  0x28   : > { %337 = vst.msk [vmem:[#allocation2 + $0xd8] sm:$0xff] %vm327_vm0, %v3176_v41 }
  0x29   : > { %329 = vst.msk [vmem:[#allocation2 + $0x18] sm:$0xff] %vm327_vm0, %v312_v42  ;;  %v1218_v42 = vld [vmem:[%s4465_s1 + $0x50] sm:$0xff] }
  0x2a   : > { %341 = vst.msk [vmem:[#allocation2 + $0x138] sm:$0xff] %vm327_vm0, %v2525_v43 }
  0x2b   : > { %339 = vst.msk [vmem:[#allocation2 + $0x108] sm:$0xff] %vm327_vm0, %v3190_v45 }
  0x2c   : > { %396 = vrot.lane.b32.xlu1 %v3029_v9, %s2908_s6  ;;  %394 = vrot.lane.b32.xlu0 %v3032_v10, %s2908_s6  ;;  %340 = vst.msk [vmem:[#allocation2 + $0x120] sm:$0xff] %vm327_vm0, %v3193_v46 }
  0x2d   : > { %398 = vrot.lane.b32.xlu2 %v3035_v11, %s2908_s6  ;;  %343 = vst.msk [vmem:[#allocation2 + $0x168] sm:$0xff] %vm327_vm0, %v2527_v47 }
  0x2e   : > { %342 = vst.msk [vmem:[#allocation2 + $0x150] sm:$0xff] %vm327_vm0, %v3209_v49 }
  0x34   : > { %402 = vrot.lane.b32.xlu1 %v3044_v12, %s2908_s6  ;;  %400 = vrot.lane.b32.xlu0 %v3047_v13, %s2908_s6 }
  0x35   : > { %404 = vrot.lane.b32.xlu2 %v3050_v14, %s2908_s6 }
  0x3c   : > { %473 = vrot.lane.b32.xlu1 %v441_v15, %s2909_s7  ;;  %406 = vrot.lane.b32.xlu0 %v3060_v16, %s2908_s6  ;;  %v1220_v15 = vld [vmem:[%s4465_s1 + $0x60] sm:$0xff] }
  0x3d   : > { %475 = vrot.lane.b32.xlu2 %v442_v17, %s2909_s7 }
  0x44   : > { %479 = vrot.lane.b32.xlu1 %v3068_v18, %s2909_s7  ;;  %477 = vrot.lane.b32.xlu0 %v3071_v19, %s2909_s7 }
  0x45   : > { %481 = vrot.lane.b32.xlu2 %v3074_v20, %s2909_s7 }
  0x4c   : > { %485 = vrot.lane.b32.xlu1 %v3083_v21, %s2909_s7  ;;  %483 = vrot.lane.b32.xlu0 %v3086_v22, %s2909_s7 }
  0x4d   : > { %487 = vrot.lane.b32.xlu2 %v3089_v23, %s2909_s7 }
  0x54   : > { %491 = vrot.lane.b32.xlu1 %v3098_v24, %s2909_s7  ;;  %489 = vrot.lane.b32.xlu0 %v3101_v25, %s2909_s7 }
  0x55   : > { %493 = vrot.lane.b32.xlu2 %v3104_v26, %s2909_s7 }
  0x5c   : > { %497 = vrot.lane.b32.xlu1 %v3113_v27, %s2909_s7  ;;  %495 = vrot.lane.b32.xlu0 %v3116_v28, %s2909_s7 }
  0x5d   : > { %499 = vrot.lane.b32.xlu2 %v3119_v29, %s2909_s7 }
  0x64   : > { %503 = vrot.lane.b32.xlu1 %v3128_v30, %s2909_s7  ;;  %501 = vrot.lane.b32.xlu0 %v3131_v31, %s2909_s7  ;;  %s2912_s7 = smov 52  }
  0x65   : > { %573 = vrot.lane.b32.xlu2 %v2514_v32, %s2910_s8 }
  0x6c   : > { %577 = vrot.lane.b32.xlu1 %v3139_v33, %s2910_s8  ;;  %575 = vrot.lane.b32.xlu0 %v2515_v36, %s2910_s8  ;;  %v1219_v36 = vld [vmem:[%s4465_s1 + $0x58] sm:$0xff] }
  0x6d   : > { %579 = vrot.lane.b32.xlu2 %v3147_v35, %s2910_s8 }
  0x6f   : > { %v385_v44 = vpop.permute.xlu2 %384 }
  0x70   : > { %429 = vst.msk [vmem:[#allocation2 + $0x60] sm:$0xff] %vm424_vm1, %v385_v44  ;;  %v1216_v44 = vld [vmem:[%s4465_s1 + $0x40] sm:$0xff] }
  0x74   : > { %583 = vrot.lane.b32.xlu1 %v3158_v38, %s2910_s8  ;;  %581 = vrot.lane.b32.xlu0 %v3163_v39, %s2910_s8 }
  0x75   : > { %585 = vrot.lane.b32.xlu2 %v3154_v37, %s2910_s8 }
  0x77   : > { %v387_v48 = vpop.permute.xlu2 %386 }
  0x78   : > { %430 = vst.msk [vmem:[#allocation2 + $0x78] sm:$0xff] %vm424_vm1, %v387_v48 }
  0x7c   : > { %589 = vrot.lane.b32.xlu1 %v3171_v40, %s2910_s8  ;;  %587 = vrot.lane.b32.xlu0 %v3176_v41, %s2910_s8 }
  0x7d   : > { %591 = vrot.lane.b32.xlu2 %v3190_v45, %s2910_s8 }
  0x7f   : > { %v393_v50 = vpop.permute.xlu2 %392 }
  0x80   : > { %433 = vst.msk [vmem:[#allocation2 + $0xc0] sm:$0xff] %vm424_vm1, %v393_v50 }
  0x84   : > { %595 = vrot.lane.b32.xlu1 %v2525_v43, %s2910_s8  ;;  %593 = vrot.lane.b32.xlu0 %v3193_v46, %s2910_s8  ;;  %v1217_v43 = vld [vmem:[%s4465_s1 + $0x48] sm:$0xff] }
  0x85   : > { %597 = vrot.lane.b32.xlu2 %v3209_v49, %s2910_s8 }
  0x86   : > { %v381_v51 = vpop.permute.xlu1 %380  ;;  %v377_v52 = vpop.permute.xlu0 %376 }
  0x87   : > { %427 = vst.msk [vmem:[#allocation2 + $0x30] sm:$0xff] %vm424_vm1, %v381_v51  ;;  %v399_v53 = vpop.permute.xlu2 %398  ;;  %v1215_v51 = vld [vmem:[%s4465_s1 + $0x38] sm:$0xff] }
  0x88   : > { %425 = vst.msk [vmem:[#allocation2] sm:$0xff] %vm424_vm1, %v377_v52  ;;  %v1214_v52 = vld [vmem:[%s4465_s1 + $0x30] sm:$0xff] }
  0x89   : > { %436 = vst.msk [vmem:[#allocation2 + $0x108] sm:$0xff] %vm424_vm1, %v399_v53  ;;  %v1213_v53 = vld [vmem:[%s4465_s1 + $0x28] sm:$0xff] }
  0x8c   : > { %601 = vrot.lane.b32.xlu1 %v3228_v54, %s2910_s8  ;;  %599 = vrot.lane.b32.xlu0 %v2527_v47, %s2910_s8 }
  0x8d   : > { %603 = vrot.lane.b32.xlu2 %v3232_v55, %s2910_s8 }
  0x8e   : > { %v383_v56 = vpop.permute.xlu1 %382  ;;  %v379_v57 = vpop.permute.xlu0 %378 }
  0x8f   : > { %428 = vst.msk [vmem:[#allocation2 + $0x48] sm:$0xff] %vm424_vm1, %v383_v56  ;;  %v405_v58 = vpop.permute.xlu2 %404  ;;  %v3312_v56 = vld [vmem:[%s2987_s30 + $0xc1] sm:$0xff] }
  0x90   : > { %426 = vst.msk [vmem:[#allocation2 + $0x18] sm:$0xff] %vm424_vm1, %v379_v57  ;;  %v1212_v57 = vld [vmem:[%s4465_s1 + $0x20] sm:$0xff] }
  0x91   : > { %439 = vst.msk [vmem:[#allocation2 + $0x150] sm:$0xff] %vm424_vm1, %v405_v58 }
  0x94   : > { %689 = vrot.lane.b32.xlu1 %v3002_v3, %s2911_s9  ;;  %687 = vrot.lane.b32.xlu0 %v2990_v0, %s2911_s9  ;;  %v1222_v3 = vld [vmem:[%s4465_s1 + $0x70] sm:$0xff] }
  0x95   : > { %691 = vrot.lane.b32.xlu2 %v2997_v2, %s2911_s9  ;;  %1307 = vmatpush.msra.mxu0 %v1222_v3 }
  0x96   : > { %v391_v59 = vpop.permute.xlu1 %390  ;;  %v389_v60 = vpop.permute.xlu0 %388  ;;  %2648 = vmatpush.msra.mxu3 %v1222_v3 }
  0x97   : > { %432 = vst.msk [vmem:[#allocation2 + $0xa8] sm:$0xff] %vm424_vm1, %v391_v59  ;;  %v476_v61 = vpop.permute.xlu2 %475  ;;  %1308 = vmatpush.msra.mxu0 %v1221_v4 }
  0x98   : > { %431 = vst.msk [vmem:[#allocation2 + $0x90] sm:$0xff] %vm424_vm1, %v389_v60  ;;  %2649 = vmatpush.msra.mxu3 %v1221_v4 }
  0x99   : > { %523 = vst.msk [vmem:[#allocation2 + $0x18] sm:$0xff] %vm521_vm2, %v476_v61  ;;  %1309 = vmatpush.msra.mxu0 %v1220_v15  ;;  %v1211_v61 = vld [vmem:[%s4465_s1 + $0x18] sm:$0xff] }
  0x9a   : > { %2650 = vmatpush.msra.mxu3 %v1220_v15 }
  0x9b   : > { %1310 = vmatpush.msra.mxu0 %v1219_v36 }
  0x9c   : > { %695 = vrot.lane.b32.xlu1 %v3017_v7, %s2911_s9  ;;  %693 = vrot.lane.b32.xlu0 %v3006_v5, %s2911_s9 }
  0x9d   : > { %697 = vrot.lane.b32.xlu2 %v3014_v6, %s2911_s9  ;;  %2651 = vmatpush.msra.mxu3 %v1219_v36 }
  0x9e   : > { %v397_v62 = vpop.permute.xlu1 %396  ;;  %v395_v63 = vpop.permute.xlu0 %394  ;;  %1311 = vmatpush.msra.mxu0 %v1218_v42 }
  0x9f   : > { %435 = vst.msk [vmem:[#allocation2 + $0xf0] sm:$0xff] %vm424_vm1, %v397_v62  ;;  %v482_v0 = vpop.permute.xlu2 %481  ;;  %2652 = vmatpush.msra.mxu3 %v1218_v42  ;;  %v1210_v62 = vld [vmem:[%s4465_s1 + $0x10] sm:$0xff] }
  0xa0   : > { %434 = vst.msk [vmem:[#allocation2 + $0xd8] sm:$0xff] %vm424_vm1, %v395_v63  ;;  %1312 = vmatpush.msra.mxu0 %v1217_v43  ;;  %v3332_v63 = vld [vmem:[%s2987_s30 + $0xc9] sm:$0xff] }
  0xa1   : > { %526 = vst.msk [vmem:[#allocation2 + $0x60] sm:$0xff] %vm521_vm2, %v482_v0  ;;  %2653 = vmatpush.msra.mxu3 %v1217_v43  ;;  %v1209_v0 = vld [vmem:[%s4465_s1 + $0x8] sm:$0xff] }
  0xa2   : > { %1313 = vmatpush.msra.mxu0 %v1216_v44 }
  0xa3   : > { %2654 = vmatpush.msra.mxu3 %v1216_v44 }
  0xa4   : > { %701 = vrot.lane.b32.xlu1 %v3032_v10, %s2911_s9  ;;  %699 = vrot.lane.b32.xlu0 %v3020_v8, %s2911_s9 }
  0xa5   : > { %703 = vrot.lane.b32.xlu2 %v3029_v9, %s2911_s9  ;;  %1314 = vmatpush.msra.mxu0 %v1215_v51 }
  0xa6   : > { %v403_v17 = vpop.permute.xlu1 %402  ;;  %v401_v32 = vpop.permute.xlu0 %400  ;;  %2655 = vmatpush.msra.mxu3 %v1215_v51 }
  0xa7   : > { %438 = vst.msk [vmem:[#allocation2 + $0x138] sm:$0xff] %vm424_vm1, %v403_v17  ;;  %v488_v34 = vpop.permute.xlu2 %487  ;;  %1315 = vmatpush.msra.mxu0 %v1214_v52 }
  0xa8   : > { %437 = vst.msk [vmem:[#allocation2 + $0x120] sm:$0xff] %vm424_vm1, %v401_v32  ;;  %2656 = vmatpush.msra.mxu3 %v1214_v52 }
  0xa9   : > { %529 = vst.msk [vmem:[#allocation2 + $0xa8] sm:$0xff] %vm521_vm2, %v488_v34  ;;  %1316 = vmatpush.msra.mxu0 %v1213_v53 }
  0xaa   : > { %2657 = vmatpush.msra.mxu3 %v1213_v53 }
  0xab   : > { %1317 = vmatpush.msra.mxu0 %v1212_v57 }
  0xac   : > { %707 = vrot.lane.b32.xlu1 %v3047_v13, %s2911_s9  ;;  %705 = vrot.lane.b32.xlu0 %v3035_v11, %s2911_s9 }
  0xad   : > { %709 = vrot.lane.b32.xlu2 %v3044_v12, %s2911_s9  ;;  %2658 = vmatpush.msra.mxu3 %v1212_v57 }
  0xae   : > { %v474_v47 = vpop.permute.xlu1 %473  ;;  %v407_v48 = vpop.permute.xlu0 %406  ;;  %1318 = vmatpush.msra.mxu0 %v1211_v61 }
  0xaf   : > { %522 = vst.msk [vmem:[#allocation2] sm:$0xff] %vm521_vm2, %v474_v47  ;;  %v494_v50 = vpop.permute.xlu2 %493  ;;  %2659 = vmatpush.msra.mxu3 %v1211_v61 }
  0xb0   : > { %440 = vst.msk [vmem:[#allocation2 + $0x168] sm:$0xff] %vm424_vm1, %v407_v48  ;;  %1319 = vmatpush.msra.mxu0 %v1210_v62 }
  0xb1   : > { %532 = vst.msk [vmem:[#allocation2 + $0xf0] sm:$0xff] %vm521_vm2, %v494_v50  ;;  %2660 = vmatpush.msra.mxu3 %v1210_v62 }
  0xb2   : > { %1320 = vmatpush.msra.mxu0 %v1209_v0 }
  0xb3   : > { %2661 = vmatpush.msra.mxu3 %v1209_v0 }
  0xb4   : > { %713 = vrot.lane.b32.xlu1 %v3060_v16, %s2911_s9  ;;  %711 = vrot.lane.b32.xlu0 %v3050_v14, %s2911_s9 }
  0xb5   : > { %715 = vrot.lane.b32.xlu2 %v3312_v56, %s2911_s9  ;;  %1321 = vmatpush.msra.mxu0 %v1208_v1 }
  0xb6   : > { %v480_v58 = vpop.permute.xlu1 %479  ;;  %v478_v59 = vpop.permute.xlu0 %477  ;;  %2662 = vmatpush.msra.mxu3 %v1208_v1 }
  0xb7   : > { %525 = vst.msk [vmem:[#allocation2 + $0x48] sm:$0xff] %vm521_vm2, %v480_v58  ;;  %v500_v60 = vpop.permute.xlu2 %499 }
  0xb8   : > { %524 = vst.msk [vmem:[#allocation2 + $0x30] sm:$0xff] %vm521_vm2, %v478_v59 }
  0xb9   : > { %535 = vst.msk [vmem:[#allocation2 + $0x138] sm:$0xff] %vm521_vm2, %v500_v60 }
  0xbc   : > { %784 = vrot.lane.b32.xlu1 %v3071_v19, %s2912_s7  ;;  %717 = vrot.lane.b32.xlu0 %v3332_v63, %s2911_s9  ;;  %s2913_s9 = smov 124  }
  0xbd   : > { %786 = vrot.lane.b32.xlu2 %v3068_v18, %s2912_s7 }
  0xbe   : > { %v486_v3 = vpop.permute.xlu1 %485  ;;  %v484_v4 = vpop.permute.xlu0 %483 }
  0xbf   : > { %528 = vst.msk [vmem:[#allocation2 + $0x90] sm:$0xff] %vm521_vm2, %v486_v3  ;;  %v574_v19 = vpop.permute.xlu2 %573 }
  0xc0   : > { %527 = vst.msk [vmem:[#allocation2 + $0x78] sm:$0xff] %vm521_vm2, %v484_v4 }
  0xc1   : > { %622 = vst.msk [vmem:[#allocation2] sm:$0xff] %vm621_vm3, %v574_v19 }
  0xc2   : > { %624 = vst.msk [vmem:[#allocation2 + $0x8] sm:$0xff] %vm623_vm4, %v574_v19  ;;  %v3484_v19 = vld [vmem:[%s4465_s1 + $0x138] sm:$0xff] }
  0xc4   : > { %790 = vrot.lane.b32.xlu1 %v3086_v22, %s2912_s7  ;;  %788 = vrot.lane.b32.xlu0 %v3074_v20, %s2912_s7 }
  0xc5   : > { %792 = vrot.lane.b32.xlu2 %v3083_v21, %s2912_s7 }
  0xc6   : > { %v492_v18 = vpop.permute.xlu1 %491  ;;  %v490_v15 = vpop.permute.xlu0 %489 }
  0xc7   : > { %531 = vst.msk [vmem:[#allocation2 + $0xd8] sm:$0xff] %vm521_vm2, %v492_v18  ;;  %v580_v17 = vpop.permute.xlu2 %579  ;;  %v1239_v18 = vld [vmem:[%s4465_s1 + $0xf8] sm:$0xff] }
  0xc8   : > { %530 = vst.msk [vmem:[#allocation2 + $0xc0] sm:$0xff] %vm521_vm2, %v490_v15  ;;  %v1160_v32 = vld [vmem:[#allocation2] sm:$0xff]  ;;  %1371 = vmatpush.msra.mxu1 %v1239_v18  ;;  %v1238_v15 = vld [vmem:[%s4465_s1 + $0xf0] sm:$0xff]  ;;  %2663 = vmatpush.msrb.mxu3 %v1239_v18 }
  0xc9   : > { %629 = vst.msk [vmem:[#allocation2 + $0x48] sm:$0xff] %vm621_vm3, %v580_v17  ;;  %1322 = vmatmul.f32.vlgmr.msra.gmra.mxu0 %v1160_v32  ;;  %v1237_v32 = vld [vmem:[%s4465_s1 + $0xe8] sm:$0xff] }
  0xca   : > { %630 = vst.msk [vmem:[#allocation2 + $0x50] sm:$0xff] %vm623_vm4, %v580_v17  ;;  %v3505_v17 = vld [vmem:[%s4465_s1 + $0x128] sm:$0xff]  ;;  %1372 = vmatpush.msra.mxu1 %v1238_v15  ;;  %2664 = vmatpush.msrb.mxu3 %v1238_v15  ;;  %v2557_v15 = vld [vmem:[%s2987_s30 + $0x9a] sm:$0xff] }
  0xcc   : > { %981 = vrot.lane.b32.xlu1 %v2997_v2, %s2913_s9  ;;  %794 = vrot.lane.b32.xlu0 %v3089_v23, %s2912_s7 }
  0xcd   : > { %1095 = vrot.lane.b32.xlu2 %v3074_v20, %s2914_s11  ;;  %1373 = vmatpush.msra.mxu1 %v1237_v32 }
  0xce   : > { %v498_v34 = vpop.permute.xlu1 %497  ;;  %v496_v36 = vpop.permute.xlu0 %495  ;;  %2665 = vmatpush.msrb.mxu3 %v1237_v32 }
  0xcf   : > { %534 = vst.msk [vmem:[#allocation2 + $0x120] sm:$0xff] %vm521_vm2, %v498_v34  ;;  %v586_v42 = vpop.permute.xlu2 %585 }
  0xd0   : > { %533 = vst.msk [vmem:[#allocation2 + $0x108] sm:$0xff] %vm521_vm2, %v496_v36 }
  0xd1   : > { %635 = vst.msk [vmem:[#allocation2 + $0x90] sm:$0xff] %vm621_vm3, %v586_v42 }
  0xd2   : > { %636 = vst.msk [vmem:[#allocation2 + $0x98] sm:$0xff] %vm623_vm4, %v586_v42 }
  0xd4   : > { %983 = vrot.lane.b32.xlu1 %v3006_v5, %s2913_s9  ;;  %796 = vrot.lane.b32.xlu0 %v3101_v25, %s2912_s7 }
  0xd5   : > { %1097 = vrot.lane.b32.xlu2 %v3086_v22, %s2914_s11 }
  0xd6   : > { %v504_v2 = vpop.permute.xlu1 %503  ;;  %v502_v43 = vpop.permute.xlu0 %501 }
  0xd7   : > { %537 = vst.msk [vmem:[#allocation2 + $0x168] sm:$0xff] %vm521_vm2, %v504_v2  ;;  %v592_v20 = vpop.permute.xlu2 %591  ;;  %v1236_v2 = vld [vmem:[%s4465_s1 + $0xe0] sm:$0xff] }
  0xd8   : > { %536 = vst.msk [vmem:[#allocation2 + $0x150] sm:$0xff] %vm521_vm2, %v502_v43  ;;  %v1178_v60 = vld [vmem:[#allocation2 + $0x90] sm:$0xff]  ;;  %v3533_v43 = vld [vmem:[%s4465_s1 + $0x118] sm:$0xff]  ;;  %1374 = vmatpush.msra.mxu1 %v1236_v2  ;;  %2666 = vmatpush.msrb.mxu3 %v1236_v2 }
  0xd9   : > { %641 = vst.msk [vmem:[#allocation2 + $0xd8] sm:$0xff] %vm621_vm3, %v592_v20 }
  0xda   : > { %642 = vst.msk [vmem:[#allocation2 + $0xe0] sm:$0xff] %vm623_vm4, %v592_v20  ;;  %v1235_v20 = vld [vmem:[%s4465_s1 + $0xd8] sm:$0xff] }
  0xdb   : > { %1375 = vmatpush.msra.mxu1 %v1235_v20  ;;  %2667 = vmatpush.msrb.mxu3 %v1235_v20 }
  0xdc   : > { %985 = vrot.lane.b32.xlu1 %v3017_v7, %s2913_s9  ;;  %798 = vrot.lane.b32.xlu0 %v3098_v24, %s2912_s7 }
  0xdd   : > { %1099 = vrot.lane.b32.xlu2 %v3083_v21, %s2914_s11 }
  0xde   : > { %v578_v5 = vpop.permute.xlu1 %577  ;;  %v576_v44 = vpop.permute.xlu0 %575 }
  0xdf   : > { %627 = vst.msk [vmem:[#allocation2 + $0x30] sm:$0xff] %vm621_vm3, %v578_v5  ;;  %v598_v22 = vpop.permute.xlu2 %597 }
  0xe0   : > { %628 = vst.msk [vmem:[#allocation2 + $0x38] sm:$0xff] %vm623_vm4, %v578_v5  ;;  %v3541_v5 = vld [vmem:[%s4465_s1 + $0x110] sm:$0xff] }
  0xe1   : > { %625 = vst.msk [vmem:[#allocation2 + $0x18] sm:$0xff] %vm621_vm3, %v576_v44 }
  0xe2   : > { %626 = vst.msk [vmem:[#allocation2 + $0x20] sm:$0xff] %vm623_vm4, %v576_v44  ;;  %v2578_v44 = vld [vmem:[%s2987_s30 + $0xd8] sm:$0xff] }
  0xe3   : > { %647 = vst.msk [vmem:[#allocation2 + $0x120] sm:$0xff] %vm621_vm3, %v598_v22 }
  0xe4   : > { %987 = vrot.lane.b32.xlu1 %v3014_v6, %s2913_s9  ;;  %884 = vrot.lane.b32.xlu0 %v3139_v33, %s2915_s12  ;;  %648 = vst.msk [vmem:[#allocation2 + $0x128] sm:$0xff] %vm623_vm4, %v598_v22  ;;  %v1234_v22 = vld [vmem:[%s4465_s1 + $0xd0] sm:$0xff] }
  0xe5   : > { %1101 = vrot.lane.b32.xlu2 %v3089_v23, %s2914_s11  ;;  %1376 = vmatpush.msra.mxu1 %v1234_v22 }
  0xe6   : > { %v584_v7 = vpop.permute.xlu1 %583  ;;  %v582_v21 = vpop.permute.xlu0 %581  ;;  %v1166_v50 = vld [vmem:[#allocation2 + $0x30] sm:$0xff]  ;;  %2668 = vmatpush.msrb.mxu3 %v1234_v22 }
  0xe7   : > { %633 = vst.msk [vmem:[#allocation2 + $0x78] sm:$0xff] %vm621_vm3, %v584_v7  ;;  %v604_v48 = vpop.permute.xlu2 %603 }
  0xe8   : > { %634 = vst.msk [vmem:[#allocation2 + $0x80] sm:$0xff] %vm623_vm4, %v584_v7  ;;  %v1163_v47 = vld [vmem:[#allocation2 + $0x18] sm:$0xff]  ;;  %v3555_v7 = vld [vmem:[%s4465_s1 + $0x108] sm:$0xff] }
  0xe9   : > { %631 = vst.msk [vmem:[#allocation2 + $0x60] sm:$0xff] %vm621_vm3, %v582_v21  ;;  %1325 = vmatmul.f32.gmra.mxu0 %v1163_v47 }
  0xea   : > { %632 = vst.msk [vmem:[#allocation2 + $0x68] sm:$0xff] %vm623_vm4, %v582_v21  ;;  %v1196_v6 = vld [vmem:[#allocation2 + $0x120] sm:$0xff] }
  0xeb   : > { %653 = vst.msk [vmem:[#allocation2 + $0x168] sm:$0xff] %vm621_vm3, %v604_v48  ;;  %1358 = vmatmul.f32.vlgmr.msra.gmra.mxu3 %v1196_v6 }
  0xec   : > { %989 = vrot.lane.b32.xlu1 %v3020_v8, %s2913_s9  ;;  %886 = vrot.lane.b32.xlu0 %v3147_v35, %s2915_s12  ;;  %654 = vst.msk [vmem:[#allocation2 + $0x170] sm:$0xff] %vm623_vm4, %v604_v48  ;;  %v1169_v35 = vld [vmem:[#allocation2 + $0x48] sm:$0xff]  ;;  %v3567_v48 = vld [vmem:[%s4465_s1 + $0x100] sm:$0xff] }
  0xed   : > { %1103 = vrot.lane.b32.xlu2 %v3101_v25, %s2914_s11 }
  0xee   : > { %v590_v23 = vpop.permute.xlu1 %589  ;;  %v588_v33 = vpop.permute.xlu0 %587  ;;  %v1175_v57 = vld [vmem:[#allocation2 + $0x78] sm:$0xff] }
  0xef   : > { %639 = vst.msk [vmem:[#allocation2 + $0xc0] sm:$0xff] %vm621_vm3, %v590_v23  ;;  %v692_v51 = vpop.permute.xlu2 %691 }
  0xf0   : > { %640 = vst.msk [vmem:[#allocation2 + $0xc8] sm:$0xff] %vm623_vm4, %v590_v23 }
  0xf1   : > { %637 = vst.msk [vmem:[#allocation2 + $0xa8] sm:$0xff] %vm621_vm3, %v588_v33  ;;  %1328 = vmatmul.f32.gmra.mxu0 %v1166_v50  ;;  %v1232_v50 = vld [vmem:[%s4465_s1 + $0xc0] sm:$0xff] }
  0xf2   : > { %638 = vst.msk [vmem:[#allocation2 + $0xb0] sm:$0xff] %vm623_vm4, %v588_v33  ;;  %v1205_v1 = vld [vmem:[#allocation2 + $0x168] sm:$0xff]  ;;  %v2594_v33 = vld [vmem:[%s2987_s30 + $0xd9] sm:$0xff] }
  0xf3   : > { %738 = vst.msk [vmem:[#allocation2 + $0x38] sm:$0xff] %vm735_vm5, %v692_v51  ;;  %v1231_v51 = vld [vmem:[%s4465_s1 + $0xb8] sm:$0xff] }
  0xf4   : > { %991 = vrot.lane.b32.xlu1 %v3032_v10, %s2913_s9  ;;  %888 = vrot.lane.b32.xlu0 %v3163_v39, %s2915_s12  ;;  %v1172_v39 = vld [vmem:[#allocation2 + $0x60] sm:$0xff] }
  0xf5   : > { %1105 = vrot.lane.b32.xlu2 %v3098_v24, %s2914_s11 }
  0xf6   : > { %v596_v8 = vpop.permute.xlu1 %595  ;;  %v594_v25 = vpop.permute.xlu0 %593  ;;  %v1184_v4 = vld [vmem:[#allocation2 + $0xc0] sm:$0xff] }
  0xf7   : > { %645 = vst.msk [vmem:[#allocation2 + $0x108] sm:$0xff] %vm621_vm3, %v596_v8  ;;  %v698_v52 = vpop.permute.xlu2 %697 }
  0xf8   : > { %646 = vst.msk [vmem:[#allocation2 + $0x110] sm:$0xff] %vm623_vm4, %v596_v8  ;;  %v1230_v8 = vld [vmem:[%s4465_s1 + $0xb0] sm:$0xff] }
  0xf9   : > { %643 = vst.msk [vmem:[#allocation2 + $0xf0] sm:$0xff] %vm621_vm3, %v594_v25  ;;  %1331 = vmatmul.f32.gmra.mxu0 %v1169_v35 }
  0xfa   : > { %644 = vst.msk [vmem:[#allocation2 + $0xf8] sm:$0xff] %vm623_vm4, %v594_v25 }
  0xfb   : > { %741 = vst.msk [vmem:[#allocation2 + $0x80] sm:$0xff] %vm735_vm5, %v698_v52  ;;  %v1229_v52 = vld [vmem:[%s4465_s1 + $0xa8] sm:$0xff] }
  0xfc   : > { %993 = vrot.lane.b32.xlu1 %v3029_v9, %s2913_s9  ;;  %890 = vrot.lane.b32.xlu0 %v3158_v38, %s2915_s12 }
  0xfd   : > { %1107 = vrot.lane.b32.xlu2 %v3104_v26, %s2914_s11 }
  0xfe   : > { %v602_v10 = vpop.permute.xlu1 %601  ;;  %v600_v24 = vpop.permute.xlu0 %599 }
  0xff   : > { %651 = vst.msk [vmem:[#allocation2 + $0x150] sm:$0xff] %vm621_vm3, %v602_v10  ;;  %v704_v53 = vpop.permute.xlu2 %703 }
 0x100   : > { %652 = vst.msk [vmem:[#allocation2 + $0x158] sm:$0xff] %vm623_vm4, %v602_v10  ;;  %v1190_v6 = vld [vmem:[#allocation2 + $0xf0] sm:$0xff] }
 0x101   : > { %649 = vst.msk [vmem:[#allocation2 + $0x138] sm:$0xff] %vm621_vm3, %v600_v24  ;;  %1334 = vmatmul.f32.gmra.mxu0 %v1172_v39  ;;  %v3600_v39 = vld [vmem:[%s2987_s30 + $0xca] sm:$0xff] }
 0x102   : > { %650 = vst.msk [vmem:[#allocation2 + $0x140] sm:$0xff] %vm623_vm4, %v600_v24  ;;  %v1228_v24 = vld [vmem:[%s4465_s1 + $0xa0] sm:$0xff] }
 0x103   : > { %744 = vst.msk [vmem:[#allocation2 + $0xc8] sm:$0xff] %vm735_vm5, %v704_v53  ;;  %v1226_v53 = vld [vmem:[%s4465_s1 + $0x90] sm:$0xff] }
 0x104   : > { %995 = vrot.lane.b32.xlu1 %v3035_v11, %s2913_s9  ;;  %892 = vrot.lane.b32.xlu0 %v3154_v37, %s2915_s12 }
 0x105   : > { %1109 = vrot.lane.b32.xlu2 %v3116_v28, %s2914_s11 }
 0x106   : > { %v690_v9 = vpop.permute.xlu1 %689  ;;  %v688_v38 = vpop.permute.xlu0 %687  ;;  %v1202_v61 = vld [vmem:[#allocation2 + $0x150] sm:$0xff] }
 0x107   : > { %737 = vst.msk [vmem:[#allocation2 + $0x20] sm:$0xff] %vm735_vm5, %v690_v9  ;;  %v710_v59 = vpop.permute.xlu2 %709 }
 0x108   : > { %736 = vst.msk [vmem:[#allocation2 + $0x8] sm:$0xff] %vm735_vm5, %v688_v38  ;;  %v1199_v58 = vld [vmem:[#allocation2 + $0x138] sm:$0xff] }
 0x109   : > { %1337 = vmatmul.f32.gmra.mxu0 %v1175_v57  ;;  %1361 = vmatmul.f32.gmra.mxu3 %v1199_v58  ;;  %747 = vst.msk [vmem:[#allocation2 + $0x110] sm:$0xff] %vm735_vm5, %v710_v59  ;;  %v2579_v57 = vld [vmem:[%s2987_s30 + $0xe0] sm:$0xff] }
 0x10a   : > { %v1224_v58 = vld [vmem:[%s4465_s1 + $0x80] sm:$0xff] }
 0x10b   : > { %v2595_v59 = vld [vmem:[%s2987_s30 + $0xe1] sm:$0xff] }
 0x10c   : > { %808 = vrot.lane.b32.xlu1 %v3131_v31, %s2912_s7  ;;  %894 = vrot.lane.b32.xlu0 %v3176_v41, %s2915_s12 }
 0x10d   : > { %908 = vrot.lane.b32.xlu2 %v3228_v54, %s2915_s12  ;;  %v1181_v54 = vld [vmem:[#allocation2 + $0xa8] sm:$0xff] }
 0x10e   : > { %v696_v11 = vpop.permute.xlu1 %695  ;;  %v694_v37 = vpop.permute.xlu0 %693 }
 0x10f   : > { %740 = vst.msk [vmem:[#allocation2 + $0x68] sm:$0xff] %vm735_vm5, %v696_v11  ;;  %v716_v62 = vpop.permute.xlu2 %715 }
 0x110   : > { %739 = vst.msk [vmem:[#allocation2 + $0x50] sm:$0xff] %vm735_vm5, %v694_v37 }
 0x111   : > { %1340 = vmatmul.f32.gmra.mxu0 %v1178_v60  ;;  %1364 = vmatmul.f32.gmra.mxu3 %v1202_v61  ;;  %750 = vst.msk [vmem:[#allocation2 + $0x158] sm:$0xff] %vm735_vm5, %v716_v62  ;;  %v2573_v61 = vld [vmem:[%s2987_s30 + $0x98] sm:$0xff] }
 0x114   : > { %1005 = vrot.lane.b32.xlu1 %v3312_v56, %s2913_s9  ;;  %997 = vrot.lane.b32.xlu0 %v3047_v13, %s2913_s9  ;;  %v3472_v13 = vld [vmem:[%s4465_s1 + $0x140] sm:$0xf] }
 0x115   : > { %1111 = vrot.lane.b32.xlu2 %v3113_v27, %s2914_s11  ;;  %2612 = vmatpush.msk.msra.mxu2 %vm1302_vm7, %v3472_v13 }
 0x116   : > { %v702_v41 = vpop.permute.xlu1 %701  ;;  %v700_v0 = vpop.permute.xlu0 %699 }
 0x117   : > { %743 = vst.msk [vmem:[#allocation2 + $0xb0] sm:$0xff] %vm735_vm5, %v702_v41  ;;  %v787_v3 = vpop.permute.xlu2 %786  ;;  %1444 = vmatpush.msra.mxu2 %v3484_v19 }
 0x118   : > { %742 = vst.msk [vmem:[#allocation2 + $0x98] sm:$0xff] %vm735_vm5, %v700_v0 }
 0x119   : > { %1343 = vmatmul.f32.gmra.mxu0 %v1181_v54  ;;  %1367 = vmatmul.f32.gmra.mxu3 %v1205_v1  ;;  %834 = vst.msk [vmem:[#allocation2 + $0x20] sm:$0xff] %vm832_vm6, %v787_v3  ;;  %v2556_v54 = vld [vmem:[%s2987_s30 + $0x92] sm:$0xff] }
 0x11c   : > { %810 = vrot.lane.b32.xlu1 %v3128_v30, %s2912_s7  ;;  %896 = vrot.lane.b32.xlu0 %v3171_v40, %s2915_s12 }
 0x11d   : > { %910 = vrot.lane.b32.xlu2 %v3232_v55, %s2915_s12  ;;  %v3493_v55 = vld [vmem:[%s4465_s1 + $0x130] sm:$0xff] }
 0x11e   : > { %v708_v27 = vpop.permute.xlu1 %707  ;;  %v706_v56 = vpop.permute.xlu0 %705  ;;  %1445 = vmatpush.msra.mxu2 %v3493_v55 }
 0x11f   : > { %746 = vst.msk [vmem:[#allocation2 + $0xf8] sm:$0xff] %vm735_vm5, %v708_v27  ;;  %v793_v40 = vpop.permute.xlu2 %792 }
 0x120   : > { %745 = vst.msk [vmem:[#allocation2 + $0xe0] sm:$0xff] %vm735_vm5, %v706_v56  ;;  %1446 = vmatpush.msra.mxu2 %v3505_v17  ;;  %v2611_v56 = vld [vmem:[%s2987_s30 + $0xe2] sm:$0xff] }
 0x121   : > { %1346 = vmatmul.f32.gmra.mxu0 %v1184_v4  ;;  %837 = vst.msk [vmem:[#allocation2 + $0x68] sm:$0xff] %vm832_vm6, %v793_v40 }
 0x124   : > { %1007 = vrot.lane.b32.xlu1 %v3332_v63, %s2913_s9  ;;  %999 = vrot.lane.b32.xlu0 %v3044_v12, %s2913_s9  ;;  %v3516_v12 = vld [vmem:[%s4465_s1 + $0x120] sm:$0xff]  ;;  %v1187_v63 = vld [vmem:[#allocation2 + $0xd8] sm:$0xff] }
 0x125   : > { %1113 = vrot.lane.b32.xlu2 %v3119_v29, %s2914_s11  ;;  %v3524_v29 = vld [vmem:[%s2987_s30 + $0xc2] sm:$0xff]  ;;  %1447 = vmatpush.msra.mxu2 %v3516_v12 }
 0x126   : > { %v714_v34 = vpop.permute.xlu1 %713  ;;  %v712_v36 = vpop.permute.xlu0 %711 }
 0x127   : > { %749 = vst.msk [vmem:[#allocation2 + $0x140] sm:$0xff] %vm735_vm5, %v714_v34  ;;  %v3521_v42 = vpop.permute.xlu2 %1095  ;;  %1448 = vmatpush.msra.mxu2 %v3533_v43 }
 0x128   : > { %748 = vst.msk [vmem:[#allocation2 + $0x128] sm:$0xff] %vm735_vm5, %v712_v36 }
 0x129   : > { %1349 = vmatmul.f32.gmra.mxu0 %v1187_v63  ;;  %1449 = vmatpush.msra.mxu2 %v3541_v5 }
 0x12b   : > { %1450 = vmatpush.msra.mxu2 %v3555_v7 }
 0x12c   : > { %812 = vrot.lane.b32.xlu1 %v3524_v29, %s2912_s7  ;;  %898 = vrot.lane.b32.xlu0 %v3190_v45, %s2915_s12  ;;  %v1233_v45 = vld [vmem:[%s4465_s1 + $0xc8] sm:$0xff] }
 0x12d   : > { %912 = vrot.lane.b32.xlu2 %v2578_v44, %s2915_s12  ;;  %1377 = vmatpush.msra.mxu1 %v1233_v45 }
 0x12e   : > { %v785_v21 = vpop.permute.xlu1 %784  ;;  %v718_v47 = vpop.permute.xlu0 %717  ;;  %1451 = vmatpush.msra.mxu2 %v3567_v48  ;;  %2669 = vmatpush.msrb.mxu3 %v1233_v45 }
 0x12f   : > { %833 = vst.msk [vmem:[#allocation2 + $0x8] sm:$0xff] %vm832_vm6, %v785_v21  ;;  %v3570_v23 = vpop.permute.xlu2 %1097  ;;  %1378 = vmatpush.msra.mxu1 %v1232_v50 }
 0x130   : > { %751 = vst.msk [vmem:[#allocation2 + $0x170] sm:$0xff] %vm735_vm5, %v718_v47  ;;  %2670 = vmatpush.msrb.mxu3 %v1232_v50 }
 0x131   : > { %1352 = vmatmul.f32.gmra.mxu0 %v1190_v6  ;;  %1379 = vmatpush.msra.mxu1 %v1231_v51 }
 0x132   : > { %2671 = vmatpush.msrb.mxu3 %v1231_v51 }
 0x133   : > { %1380 = vmatpush.msra.mxu1 %v1230_v8 }
 0x134   : > { %1009 = vrot.lane.b32.xlu1 %v2594_v33, %s2913_s9  ;;  %1001 = vrot.lane.b32.xlu0 %v3050_v14, %s2913_s9  ;;  %v1193_v14 = vld [vmem:[#allocation2 + $0x108] sm:$0xff] }
 0x135   : > { %1115 = vrot.lane.b32.xlu2 %v3131_v31, %s2914_s11  ;;  %1381 = vmatpush.msra.mxu1 %v1229_v52  ;;  %v1227_v31 = vld [vmem:[%s4465_s1 + $0x98] sm:$0xff] }
 0x136   : > { %v791_v25 = vpop.permute.xlu1 %790  ;;  %v789_v35 = vpop.permute.xlu0 %788  ;;  %2672 = vmatpush.msrb.mxu3 %v1230_v8 }
 0x137   : > { %836 = vst.msk [vmem:[#allocation2 + $0x50] sm:$0xff] %vm832_vm6, %v791_v25  ;;  %v1100_v10 = vpop.permute.xlu2 %1099  ;;  %1382 = vmatpush.msra.mxu1 %v1228_v24 }
 0x138   : > { %835 = vst.msk [vmem:[#allocation2 + $0x38] sm:$0xff] %vm832_vm6, %v789_v35  ;;  %2673 = vmatpush.msrb.mxu3 %v1229_v52 }
 0x139   : > { %1355 = vmatmul.f32.gmra.mxu0 %v1193_v14  ;;  %1383 = vmatpush.msra.mxu1 %v1227_v31 }
 0x13a   : > { %2674 = vmatpush.msrb.mxu3 %v1228_v24 }
 0x13b   : > { %1384 = vmatpush.msra.mxu1 %v1226_v53 }
 0x13c   : > { %900 = vrot.lane.b32.xlu1 %v3193_v46, %s2915_s12  ;;  %800 = vrot.lane.b32.xlu0 %v3104_v26, %s2912_s7  ;;  %v1225_v26 = vld [vmem:[%s4465_s1 + $0x88] sm:$0xff] }
 0x13d   : > { %814 = vrot.lane.b32.xlu2 %v3600_v39, %s2912_s7  ;;  %1385 = vmatpush.msra.mxu1 %v1225_v26 }
 0x13e   : > { %v3609_v9 = vpop.permute.xlu1 %981  ;;  %v795_v38 = vpop.permute.xlu0 %794  ;;  %2675 = vmatpush.msrb.mxu3 %v1227_v31 }
 0x13f   : > { %1032 = vst.msk [vmem:[#allocation2 + $0x10] sm:$0xff] %vm1031_vm8, %v3609_v9  ;;  %v1102_v46 = vpop.permute.xlu2 %1101  ;;  %1386 = vmatpush.msra.mxu1 %v1224_v58 }
 0x140   : > { %1144 = vst.msk [vmem:[#allocation2 + $0x10] sm:$0xff] %vm1143_vm9, %v3521_v42  ;;  %2676 = vmatpush.msrb.mxu3 %v1226_v53 }
 0x141   : > { %838 = vst.msk [vmem:[#allocation2 + $0x80] sm:$0xff] %vm832_vm6, %v795_v38 }
 0x142   : > { %2677 = vmatpush.msrb.mxu3 %v1225_v26 }
 0x144   : > { %1003 = vrot.lane.b32.xlu1 %v3060_v16, %s2913_s9  ;;  %914 = vrot.lane.b32.xlu0 %v2579_v57, %s2915_s12 }
 0x145   : > { %1011 = vrot.lane.b32.xlu2 %v2595_v59, %s2913_s9  ;;  %2678 = vmatpush.msrb.mxu3 %v1224_v58  ;;  %s2501_s9 = sshll.u32 %s2890_s18, 4  ;;  %s2502_s18 = sshll.u32 %s4499_s19, 5 }
 0x146   : > { %v3629_v11 = vpop.permute.xlu1 %983  ;;  %v797_v37 = vpop.permute.xlu0 %796  ;;  %p281_p6 = scmp.lt.s32.totalorder %s2501_s9, 31 }
 0x147   : > { %1034 = vst.msk [vmem:[#allocation2 + $0x28] sm:$0xff] %vm1031_vm8, %v3629_v11  ;;  %v1162_v60 = vld [vmem:[#allocation2 + $0x10] sm:$0xff]  ;;  %v1104_v16 = vpop.permute.xlu2 %1103  ;;  %2679 = vmatpush.msk.msra.mxu3 %vm1302_vm7, %v3472_v13 }
 0x148   : > { %1145 = vst.msk [vmem:[#allocation2 + $0x28] sm:$0xff] %vm1143_vm9, %v3570_v23  ;;  %2613 = vmatmul.msk.f32.vlgmr.msra.gmra.mxu2 %vm1253_vm10, %v1162_v60  ;;  %s4501_s9 = smov (!%p281_p6, %s2501_s9), 31 }
 0x149   : > { %839 = vst.msk [vmem:[#allocation2 + $0x98] sm:$0xff] %vm832_vm6, %v797_v37  ;;  %2680 = vmatpush.msra.mxu3 %v3484_v19 }
 0x14b   : > { %2681 = vmatpush.msra.mxu3 %v3493_v55 }
 0x14c   : > { %802 = vrot.lane.b32.xlu1 %v3116_v28, %s2912_s7  ;;  %1117 = vrot.lane.b32.xlu0 %v3128_v30, %s2914_s11  ;;  %v2610_v30 = vld [vmem:[%s2987_s30 + $0xda] sm:$0xff] }
 0x14d   : > { %902 = vrot.lane.b32.xlu2 %v2573_v61, %s2915_s12  ;;  %2682 = vmatpush.msra.mxu3 %v3505_v17  ;;  %v2575_v17 = vld [vmem:[%s2987_s30 + $0xb0] sm:$0xff]  ;;  %s284_s30 = sadd.s32 %s2502_s18, %s4501_s9 }
 0x14e   : > { %v3647_v62 = vpop.permute.xlu1 %985  ;;  %v799_v41 = vpop.permute.xlu0 %798 }
 0x14f   : > { %1036 = vst.msk [vmem:[#allocation2 + $0x40] sm:$0xff] %vm1031_vm8, %v3647_v62  ;;  %v1165_v0 = vld [vmem:[#allocation2 + $0x28] sm:$0xff]  ;;  %v1106_v28 = vpop.permute.xlu2 %1105  ;;  %2683 = vmatpush.msra.mxu3 %v3516_v12 }
 0x150   : > { %1146 = vst.msk [vmem:[#allocation2 + $0x40] sm:$0xff] %vm1143_vm9, %v1100_v10  ;;  %2614 = vmatmul.msk.f32.gmra.mxu2 %vm1253_vm10, %v1165_v0 }
 0x151   : > { %840 = vst.msk [vmem:[#allocation2 + $0xb0] sm:$0xff] %vm832_vm6, %v799_v41  ;;  %2684 = vmatpush.msra.mxu3 %v3533_v43 }
 0x153   : > { %2685 = vmatpush.msra.mxu3 %v3541_v5 }
 0x154   : > { %1123 = vrot.lane.b32.xlu1 %v2610_v30, %s2914_s11  ;;  %1119 = vrot.lane.b32.xlu0 %v3524_v29, %s2914_s11 }
 0x155   : > { %804 = vrot.lane.b32.xlu2 %v2556_v54, %s2912_s7  ;;  %2686 = vmatpush.msra.mxu3 %v3555_v7 }
 0x156   : > { %v988_v1 = vpop.permute.xlu1 %987  ;;  %v885_v3 = vpop.permute.xlu0 %884 }
 0x157   : > { %1038 = vst.msk [vmem:[#allocation2 + $0x58] sm:$0xff] %vm1031_vm8, %v988_v1  ;;  %v1168_v13 = vld [vmem:[#allocation2 + $0x40] sm:$0xff]  ;;  %v1108_v27 = vpop.permute.xlu2 %1107  ;;  %2687 = vmatpush.msra.mxu3 %v3567_v48 }
 0x158   : > { %1147 = vst.msk [vmem:[#allocation2 + $0x58] sm:$0xff] %vm1143_vm9, %v1102_v46  ;;  %2615 = vmatmul.msk.f32.gmra.mxu2 %vm1253_vm10, %v1168_v13 }
 0x159   : > { %933 = vst.msk [vmem:[#allocation2 + $0x8] sm:$0xff] %vm932_vm11, %v885_v3 }
 0x15a   : > { %1030 = vst.msk [vmem:[#allocation2 + $0x8] sm:$0xff] %vm1029_vm12, %v3609_v9 }
 0x15c   : > { %1121 = vrot.lane.b32.xlu1 %v3600_v39, %s2914_s11  ;;  %904 = vrot.lane.b32.xlu0 %v3209_v49, %s2915_s12 }
 0x15d   : > { %1125 = vrot.lane.b32.xlu2 %v2611_v56, %s2914_s11 }
 0x15e   : > { %v990_v4 = vpop.permute.xlu1 %989  ;;  %v887_v40 = vpop.permute.xlu0 %886 }
 0x15f   : > { %1040 = vst.msk [vmem:[#allocation2 + $0x70] sm:$0xff] %vm1031_vm8, %v990_v4  ;;  %v1171_v19 = vld [vmem:[#allocation2 + $0x58] sm:$0xff]  ;;  %v1110_v18 = vpop.permute.xlu2 %1109 }
 0x160   : > { %1148 = vst.msk [vmem:[#allocation2 + $0x70] sm:$0xff] %vm1143_vm9, %v1104_v16  ;;  %2616 = vmatmul.msk.f32.gmra.mxu2 %vm1253_vm10, %v1171_v19 }
 0x161   : > { %934 = vst.msk [vmem:[#allocation2 + $0x20] sm:$0xff] %vm932_vm11, %v887_v40  ;;  %v1161_v55 = vld [vmem:[#allocation2 + $0x8] sm:$0xff] }
 0x162   : > { %1033 = vst.msk [vmem:[#allocation2 + $0x20] sm:$0xff] %vm1029_vm12, %v3629_v11  ;;  %1387 = vmatmul.f32.vlgmr.msra.gmra.mxu1 %v1161_v55 }
 0x164   : > { %806 = vrot.lane.b32.xlu0 %v2557_v15, %s2912_s7  ;;  %906 = vrot.lane.b32.xlu1 %v2575_v17, %s2915_s12  ;;  %s3698_s7 = sshll.u32 %s284_s30, 3 }
 0x165   : > { %s3708_s8 = scalar_lea.vmem %s4467_s3, %s3698_s7  ;;  %s4326_s17 = scalar_lea.vmem %s4469_s5, %s3698_s7 }
 0x166   : > { %v992_v49 = vpop.permute.xlu1 %991  ;;  %v889_v32 = vpop.permute.xlu0 %888  ;;  %v1822_v20 = vld [vmem:[%s3708_s8 + $0x8] sm:$0xff]  ;;  %v1823_v47 = vld [vmem:[%s3708_s8 + $0x10] sm:$0xff]  ;;  %v1821_v50 = vld [vmem:[%s3708_s8] sm:$0xff]  ;;  %s4397_s27 = scalar_lea.vmem %s4468_s4, %s3698_s7 }
 0x167   : > { %1042 = vst.msk [vmem:[#allocation2 + $0x88] sm:$0xff] %vm1031_vm8, %v992_v49  ;;  %v1174_v34 = vld [vmem:[#allocation2 + $0x70] sm:$0xff]  ;;  %v909_v36 = vpop.permute.xlu2 %908  ;;  %1853 = vrot.lane.b32.xlu2 %v1821_v50, %s2914_s11  ;;  %v1825_v52 = vld [vmem:[%s3708_s8 + $0x20] sm:$0xff]  ;;  %v1826_v53 = vld [vmem:[%s3708_s8 + $0x28] sm:$0xff] }
 0x168   : > { %1149 = vst.msk [vmem:[#allocation2 + $0x88] sm:$0xff] %vm1143_vm9, %v1106_v28  ;;  %2617 = vmatmul.msk.f32.gmra.mxu2 %vm1253_vm10, %v1174_v34  ;;  %v1824_v57 = vld [vmem:[%s3708_s8 + $0x18] sm:$0xff]  ;;  %v1827_v40 = vld [vmem:[%s3708_s8 + $0x30] sm:$0xff]  ;;  %v1829_v19 = vld [vmem:[%s3708_s8 + $0x40] sm:$0xff] }
 0x169   : > { %935 = vst.msk [vmem:[#allocation2 + $0x38] sm:$0xff] %vm932_vm11, %v889_v32  ;;  %v1164_v12 = vld [vmem:[#allocation2 + $0x20] sm:$0xff]  ;;  %v1828_v3 = vld [vmem:[%s3708_s8 + $0x38] sm:$0xff]  ;;  %v1834_v34 = vld [vmem:[%s3708_s8 + $0x68] sm:$0xff] }
 0x16a   : > { %1035 = vst.msk [vmem:[#allocation2 + $0x38] sm:$0xff] %vm1029_vm12, %v3647_v62  ;;  %1390 = vmatmul.f32.gmra.mxu1 %v1164_v12  ;;  %v1832_v32 = vld [vmem:[%s3708_s8 + $0x58] sm:$0xff] }
 0x16c   : > { %1855 = vrot.lane.b32.xlu0 %v1822_v20, %s2914_s11  ;;  %1857 = vrot.lane.b32.xlu1 %v1823_v47, %s2914_s11 }
 0x16e   : > { %v994_v63 = vpop.permute.xlu1 %993  ;;  %v891_v42 = vpop.permute.xlu0 %890 }
 0x16f   : > { %1044 = vst.msk [vmem:[#allocation2 + $0xa0] sm:$0xff] %vm1031_vm8, %v994_v63  ;;  %v1177_v29 = vld [vmem:[#allocation2 + $0x88] sm:$0xff]  ;;  %v1112_v2 = vpop.permute.xlu2 %1111  ;;  %1859 = vrot.lane.b32.xlu2 %v1824_v57, %s2914_s11 }
 0x170   : > { %1150 = vst.msk [vmem:[#allocation2 + $0xa0] sm:$0xff] %vm1143_vm9, %v1108_v27  ;;  %2618 = vmatmul.msk.f32.gmra.mxu2 %vm1253_vm10, %v1177_v29  ;;  %v1833_v29 = vld [vmem:[%s3708_s8 + $0x60] sm:$0xff] }
 0x171   : > { %936 = vst.msk [vmem:[#allocation2 + $0x50] sm:$0xff] %vm932_vm11, %v891_v42  ;;  %v1167_v43 = vld [vmem:[#allocation2 + $0x38] sm:$0xff] }
 0x172   : > { %1037 = vst.msk [vmem:[#allocation2 + $0x50] sm:$0xff] %vm1029_vm12, %v988_v1  ;;  %1393 = vmatmul.f32.gmra.mxu1 %v1167_v43 }
 0x174   : > { %1861 = vrot.lane.b32.xlu0 %v1825_v52, %s2914_s11  ;;  %1863 = vrot.lane.b32.xlu1 %v1826_v53, %s2914_s11 }
 0x176   : > { %v3711_v5 = vpop.permute.xlu1 %995  ;;  %v893_v44 = vpop.permute.xlu0 %892 }
 0x177   : > { %1046 = vst.msk [vmem:[#allocation2 + $0xb8] sm:$0xff] %vm1031_vm8, %v3711_v5  ;;  %v1180_v22 = vld [vmem:[#allocation2 + $0xa0] sm:$0xff]  ;;  %v911_v7 = vpop.permute.xlu2 %910  ;;  %1865 = vrot.lane.b32.xlu2 %v1827_v40, %s2914_s11 }
 0x178   : > { %1151 = vst.msk [vmem:[#allocation2 + $0xb8] sm:$0xff] %vm1143_vm9, %v1110_v18  ;;  %2619 = vmatmul.msk.f32.gmra.mxu2 %vm1253_vm10, %v1180_v22  ;;  %v1831_v18 = vld [vmem:[%s3708_s8 + $0x50] sm:$0xff]  ;;  %v1323_v22 = vpop.f32.mrf.mxu0 }
 0x179   : > { %937 = vst.msk [vmem:[#allocation2 + $0x68] sm:$0xff] %vm932_vm11, %v893_v44  ;;  %v1170_v21 = vld [vmem:[#allocation2 + $0x50] sm:$0xff] }
 0x17a   : > { %1039 = vst.msk [vmem:[#allocation2 + $0x68] sm:$0xff] %vm1029_vm12, %v990_v4  ;;  %1396 = vmatmul.f32.gmra.mxu1 %v1170_v21 }
 0x17c   : > { %1867 = vrot.lane.b32.xlu0 %v1828_v3, %s2914_s11  ;;  %1869 = vrot.lane.b32.xlu1 %v1829_v19, %s2914_s11 }
 0x17e   : > { %v809_v45 = vpop.permute.xlu1 %808  ;;  %v895_v48 = vpop.permute.xlu0 %894 }
 0x17f   : > { %845 = vst.msk [vmem:[#allocation2 + $0x128] sm:$0xff] %vm832_vm6, %v809_v45  ;;  %v1183_v6 = vld [vmem:[#allocation2 + $0xb8] sm:$0xff]  ;;  %v1114_v23 = vpop.permute.xlu2 %1113 }
 0x180   : > { %945 = vst.msk [vmem:[#allocation2 + $0x128] sm:$0xff] %vm932_vm11, %v909_v36  ;;  %2620 = vmatmul.msk.f32.gmra.mxu2 %vm1253_vm10, %v1183_v6  ;;  %v1326_v50 = vpop.f32.mrf.mxu0 }
 0x181   : > { %938 = vst.msk [vmem:[#allocation2 + $0x80] sm:$0xff] %vm932_vm11, %v895_v48  ;;  %v1173_v33 = vld [vmem:[#allocation2 + $0x68] sm:$0xff] }
 0x182   : > { %1041 = vst.msk [vmem:[#allocation2 + $0x80] sm:$0xff] %vm1029_vm12, %v992_v49  ;;  %1399 = vmatmul.f32.gmra.mxu1 %v1173_v33  ;;  %v1830_v49 = vld [vmem:[%s3708_s8 + $0x48] sm:$0xff]  ;;  %v3822_v33 = vld [vmem:[%s4466_s2] ss:$0 sm:$0xff] }
 0x183   : > { %1871 = vrot.lane.b32.xlu2 %v1830_v49, %s2914_s11 }
 0x184   : > { %1873 = vrot.lane.b32.xlu0 %v1831_v18, %s2914_s11  ;;  %1875 = vrot.lane.b32.xlu1 %v1832_v32, %s2914_s11 }
 0x186   : > { %v1006_v51 = vpop.permute.xlu1 %1005  ;;  %v3730_v8 = vpop.permute.xlu0 %997 }
 0x187   : > { %1055 = vst.msk [vmem:[#allocation2 + $0x128] sm:$0xff] %vm1029_vm12, %v1006_v51  ;;  %v913_v25 = vpop.permute.xlu2 %912 }
 0x188   : > { %1056 = vst.msk [vmem:[#allocation2 + $0x130] sm:$0xff] %vm1031_vm8, %v1006_v51  ;;  %v1324_v51 = vadd.f32 %v3822_v33, %v1323_v22 }
 0x189   : > { %1048 = vst.msk [vmem:[#allocation2 + $0xd0] sm:$0xff] %vm1031_vm8, %v3730_v8  ;;  %v1176_v35 = vld [vmem:[#allocation2 + $0x80] sm:$0xff] }
 0x18a   : > { %1152 = vst.msk [vmem:[#allocation2 + $0xd0] sm:$0xff] %vm1143_vm9, %v1112_v2  ;;  %1402 = vmatmul.f32.gmra.mxu1 %v1176_v35  ;;  %v1835_v2 = vld [vmem:[%s3708_s8 + $0x70] sm:$0xff] }
 0x18b   : > { %1877 = vrot.lane.b32.xlu2 %v1833_v29, %s2914_s11 }
 0x18c   : > { %1879 = vrot.lane.b32.xlu0 %v1834_v34, %s2914_s11  ;;  %1881 = vrot.lane.b32.xlu1 %v1835_v2, %s2914_s11 }
 0x18e   : > { %v811_v14 = vpop.permute.xlu1 %810  ;;  %v1197_v10 = vld [vmem:[#allocation2 + $0x128] sm:$0xff]  ;;  %v897_v24 = vpop.permute.xlu0 %896 }
 0x18f   : > { %846 = vst.msk [vmem:[#allocation2 + $0x140] sm:$0xff] %vm832_vm6, %v811_v14  ;;  %1423 = vmatmul.f32.vlgmr.msrb.gmra.mxu3 %v1197_v10  ;;  %v1116_v31 = vpop.permute.xlu2 %1115  ;;  %v1329_v10 = vpop.f32.mrf.mxu0 }
 0x190   : > { %946 = vst.msk [vmem:[#allocation2 + $0x140] sm:$0xff] %vm932_vm11, %v911_v7  ;;  %v1836_v7 = vld [vmem:[%s3708_s8 + $0x78] sm:$0xff] }
 0x191   : > { %939 = vst.msk [vmem:[#allocation2 + $0x98] sm:$0xff] %vm932_vm11, %v897_v24  ;;  %v1186_v39 = vld [vmem:[#allocation2 + $0xd0] sm:$0xff]  ;;  %v1327_v24 = vadd.f32 %v3822_v33, %v1326_v50 }
 0x192   : > { %1043 = vst.msk [vmem:[#allocation2 + $0x98] sm:$0xff] %vm1029_vm12, %v994_v63  ;;  %2621 = vmatmul.msk.f32.gmra.mxu2 %vm1253_vm10, %v1186_v39 }
 0x193   : > { %1883 = vrot.lane.b32.xlu2 %v1836_v7, %s2914_s11 }
 0x196   : > { %v1008_v9 = vpop.permute.xlu1 %1007  ;;  %v3746_v38 = vpop.permute.xlu0 %999 }
 0x197   : > { %1057 = vst.msk [vmem:[#allocation2 + $0x140] sm:$0xff] %vm1029_vm12, %v1008_v9  ;;  %v815_v26 = vpop.permute.xlu2 %814 }
 0x198   : > { %1058 = vst.msk [vmem:[#allocation2 + $0x148] sm:$0xff] %vm1031_vm8, %v1008_v9 }
 0x199   : > { %1050 = vst.msk [vmem:[#allocation2 + $0xe8] sm:$0xff] %vm1031_vm8, %v3746_v38  ;;  %v1179_v46 = vld [vmem:[#allocation2 + $0x98] sm:$0xff] }
 0x19a   : > { %1153 = vst.msk [vmem:[#allocation2 + $0xe8] sm:$0xff] %vm1143_vm9, %v1114_v23  ;;  %1405 = vmatmul.f32.gmra.mxu1 %v1179_v46  ;;  %v1332_v46 = vpop.f32.mrf.mxu0 }
 0x19b   : > { %848 = vst.msk [vmem:[#allocation2 + $0x170] sm:$0xff] %vm832_vm6, %v815_v26  ;;  %v1330_v26 = vadd.f32 %v3822_v33, %v1329_v10 }
 0x19e   : > { %v813_v58 = vpop.permute.xlu1 %812  ;;  %v1200_v59 = vld [vmem:[#allocation2 + $0x140] sm:$0xff]  ;;  %v899_v11 = vpop.permute.xlu0 %898 }
 0x19f   : > { %847 = vst.msk [vmem:[#allocation2 + $0x158] sm:$0xff] %vm832_vm6, %v813_v58  ;;  %1426 = vmatmul.f32.gmra.mxu3 %v1200_v59  ;;  %v1012_v37 = vpop.permute.xlu2 %1011 }
 0x1a0   : > { %947 = vst.msk [vmem:[#allocation2 + $0x158] sm:$0xff] %vm932_vm11, %v913_v25 }
 0x1a1   : > { %940 = vst.msk [vmem:[#allocation2 + $0xb0] sm:$0xff] %vm932_vm11, %v899_v11  ;;  %v1189_v60 = vld [vmem:[#allocation2 + $0xe8] sm:$0xff] }
 0x1a2   : > { %1045 = vst.msk [vmem:[#allocation2 + $0xb0] sm:$0xff] %vm1029_vm12, %v3711_v5  ;;  %2622 = vmatmul.msk.f32.gmra.mxu2 %vm1253_vm10, %v1189_v60  ;;  %v1333_v60 = vadd.f32 %v3822_v33, %v1332_v46 }
 0x1a3   : > { %1062 = vst.msk [vmem:[#allocation2 + $0x178] sm:$0xff] %vm1031_vm8, %v1012_v37 }
 0x1a6   : > { %v1010_v16 = vpop.permute.xlu1 %1009  ;;  %v3763_v61 = vpop.permute.xlu0 %1001 }
 0x1a7   : > { %1059 = vst.msk [vmem:[#allocation2 + $0x158] sm:$0xff] %vm1029_vm12, %v1010_v16  ;;  %v903_v62 = vpop.permute.xlu2 %902 }
 0x1a8   : > { %1060 = vst.msk [vmem:[#allocation2 + $0x160] sm:$0xff] %vm1031_vm8, %v1010_v16 }
 0x1a9   : > { %1052 = vst.msk [vmem:[#allocation2 + $0x100] sm:$0xff] %vm1031_vm8, %v3763_v61  ;;  %v1182_v41 = vld [vmem:[#allocation2 + $0xb0] sm:$0xff] }
 0x1aa   : > { %1154 = vst.msk [vmem:[#allocation2 + $0x100] sm:$0xff] %vm1143_vm9, %v1116_v31  ;;  %1408 = vmatmul.f32.gmra.mxu1 %v1182_v41 }
 0x1ae   : > { %v901_v0 = vpop.permute.xlu1 %900  ;;  %v1203_v28 = vld [vmem:[#allocation2 + $0x158] sm:$0xff]  ;;  %v801_v30 = vpop.permute.xlu0 %800 }
 0x1af   : > { %1429 = vmatmul.f32.gmra.mxu3 %v1203_v28  ;;  %841 = vst.msk [vmem:[#allocation2 + $0xc8] sm:$0xff] %vm832_vm6, %v801_v30  ;;  %v805_v54 = vpop.permute.xlu2 %804 }
 0x1b0   : > { %941 = vst.msk [vmem:[#allocation2 + $0xc8] sm:$0xff] %vm932_vm11, %v901_v0 }
 0x1b1   : > { %v1192_v1 = vld [vmem:[#allocation2 + $0x100] sm:$0xff]  ;;  %1047 = vst.msk [vmem:[#allocation2 + $0xc8] sm:$0xff] %vm1029_vm12, %v3730_v8 }
 0x1b2   : > { %2623 = vmatmul.msk.f32.gmra.mxu2 %vm1253_vm10, %v1192_v1  ;;  %843 = vst.msk [vmem:[#allocation2 + $0xf8] sm:$0xff] %vm832_vm6, %v805_v54 }
 0x1b6   : > { %v3777_v13 = vpop.permute.xlu1 %1003  ;;  %v915_v27 = vpop.permute.xlu0 %914 }
 0x1b7   : > { %1054 = vst.msk [vmem:[#allocation2 + $0x118] sm:$0xff] %vm1031_vm8, %v3777_v13  ;;  %v1126_v56 = vpop.permute.xlu2 %1125 }
 0x1b8   : > { %948 = vst.msk [vmem:[#allocation2 + $0x170] sm:$0xff] %vm932_vm11, %v915_v27  ;;  %v1185_v4 = vld [vmem:[#allocation2 + $0xc8] sm:$0xff] }
 0x1b9   : > { %1061 = vst.msk [vmem:[#allocation2 + $0x170] sm:$0xff] %vm1029_vm12, %v1012_v37  ;;  %1411 = vmatmul.f32.gmra.mxu1 %v1185_v4 }
 0x1ba   : > { %1159 = vst.msk [vmem:[#allocation2 + $0x178] sm:$0xff] %vm1143_vm9, %v1126_v56 }
 0x1be   : > { %v803_v55 = vpop.permute.xlu1 %802  ;;  %v1118_v15 = vpop.permute.xlu0 %1117 }
 0x1bf   : > { %842 = vst.msk [vmem:[#allocation2 + $0xe0] sm:$0xff] %vm832_vm6, %v803_v55 }
 0x1c0   : > { %942 = vst.msk [vmem:[#allocation2 + $0xe0] sm:$0xff] %vm932_vm11, %v903_v62  ;;  %v1206_v17 = vld [vmem:[#allocation2 + $0x170] sm:$0xff]  ;;  %v1335_v62 = vpop.f32.mrf.mxu0 }
 0x1c1   : > { %1049 = vst.msk [vmem:[#allocation2 + $0xe0] sm:$0xff] %vm1029_vm12, %v3746_v38  ;;  %1432 = vmatmul.f32.gmra.mxu3 %v1206_v17  ;;  %v1207_v21 = vld [vmem:[#allocation2 + $0x178] sm:$0xff]  ;;  %v1336_v28 = vadd.f32 %v3822_v33, %v1335_v62 }
 0x1c2   : > { %1155 = vst.msk [vmem:[#allocation2 + $0x118] sm:$0xff] %vm1143_vm9, %v1118_v15  ;;  %v3853_v15 = vpop.f32.mrf.mxu3 }
 0x1c6   : > { %v1124_v36 = vpop.permute.xlu1 %1123  ;;  %v1120_v12 = vpop.permute.xlu0 %1119 }
 0x1c7   : > { %1158 = vst.msk [vmem:[#allocation2 + $0x160] sm:$0xff] %vm1143_vm9, %v1124_v36 }
 0x1c8   : > { %1156 = vst.msk [vmem:[#allocation2 + $0x130] sm:$0xff] %vm1143_vm9, %v1120_v12  ;;  %v1188_v63 = vld [vmem:[#allocation2 + $0xe0] sm:$0xff]  ;;  %v1338_v27 = vpop.f32.mrf.mxu0 }
 0x1c9   : > { %v1195_v42 = vld [vmem:[#allocation2 + $0x118] sm:$0xff]  ;;  %1414 = vmatmul.f32.gmra.mxu1 %v1188_v63  ;;  %v1339_v56 = vadd.f32 %v3822_v33, %v1338_v27 }
 0x1ca   : > { %2624 = vmatmul.msk.f32.gmra.mxu2 %vm1253_vm10, %v1195_v42  ;;  %v3856_v32 = vpop.f32.mrf.mxu3 }
 0x1cb   : > { %v1453_v45 = vpop.f32.mrf.mxu2 }
 0x1ce   : > { %v1122_v43 = vpop.permute.xlu1 %1121  ;;  %v1204_v20 = vld [vmem:[#allocation2 + $0x160] sm:$0xff]  ;;  %v905_v5 = vpop.permute.xlu0 %904 }
 0x1cf   : > { %1157 = vst.msk [vmem:[#allocation2 + $0x148] sm:$0xff] %vm1143_vm9, %v1122_v43  ;;  %v1198_v44 = vld [vmem:[#allocation2 + $0x130] sm:$0xff]  ;;  %2627 = vmatmul.msk.f32.vlgmr.msra.gmra.mxu3 %vm1253_vm10, %v1204_v20 }
 0x1d0   : > { %943 = vst.msk [vmem:[#allocation2 + $0xf8] sm:$0xff] %vm932_vm11, %v905_v5  ;;  %v1341_v49 = vpop.f32.mrf.mxu0 }
 0x1d1   : > { %1051 = vst.msk [vmem:[#allocation2 + $0xf8] sm:$0xff] %vm1029_vm12, %v3763_v61  ;;  %v1342_v34 = vadd.f32 %v3822_v33, %v1341_v49 }
 0x1d2   : > { %2625 = vmatmul.msk.f32.gmra.mxu2 %vm1253_vm10, %v1198_v44  ;;  %v3862_v29 = vpop.f32.mrf.mxu3 }
 0x1d3   : > { %v1456_v35 = vpop.f32.mrf.mxu2 }
 0x1d6   : > { %v907_v47 = vpop.permute.xlu1 %906  ;;  %v807_v48 = vpop.permute.xlu0 %806  ;;  %v1201_v6 = vld [vmem:[#allocation2 + $0x148] sm:$0xff] }
 0x1d7   : > { %2628 = vmatmul.msk.f32.gmra.mxu3 %vm1253_vm10, %v1207_v21  ;;  %844 = vst.msk [vmem:[#allocation2 + $0x110] sm:$0xff] %vm832_vm6, %v807_v48 }
 0x1d8   : > { %v1191_v23 = vld [vmem:[#allocation2 + $0xf8] sm:$0xff]  ;;  %944 = vst.msk [vmem:[#allocation2 + $0x110] sm:$0xff] %vm932_vm11, %v907_v47  ;;  %v1344_v43 = vpop.f32.mrf.mxu0 }
 0x1d9   : > { %1417 = vmatmul.f32.gmra.mxu1 %v1191_v23  ;;  %1053 = vst.msk [vmem:[#allocation2 + $0x110] sm:$0xff] %vm1029_vm12, %v3777_v13  ;;  %v1345_v20 = vadd.f32 %v3822_v33, %v1344_v43 }
 0x1da   : > { %2626 = vmatmul.msk.f32.gmra.mxu2 %vm1253_vm10, %v1201_v6  ;;  %v3866_v7 = vpop.f32.mrf.mxu3 }
 0x1db   : > { %v1459_v38 = vpop.f32.mrf.mxu2 }
 0x1de   : > { %v3896_v62 = vpop.permute.xlu1 %1857 }
 0x1df   : > { %v1388_v8 = vpop.f32.mrf.mxu1 }
 0x1e0   : > { %v1389_v25 = vadd.f32 %v1388_v8, %v1324_v51  ;;  %v1194_v52 = vld [vmem:[#allocation2 + $0x110] sm:$0xff]  ;;  %v1347_v6 = vpop.f32.mrf.mxu0 }
 0x1e1   : > { %1420 = vmatmul.f32.gmra.mxu1 %v1194_v52  ;;  %v1348_v50 = vadd.f32 %v3822_v33, %v1347_v6 }
 0x1e2   : > { %v3828_v14 = vadd.f32 %v1453_v45, %v1389_v25  ;;  %v3871_v45 = vpop.permute.xlu2 %1853 }
 0x1e3   : > { %v1462_v37 = vpop.f32.mrf.mxu2 }
 0x1e4   : > { %2740 = vtanh.f32 %v3828_v14 }
 0x1e7   : > { %v1391_v31 = vpop.f32.mrf.mxu1 }
 0x1e8   : > { %v1392_v39 = vadd.f32 %v1391_v31, %v1327_v24  ;;  %v3883_v31 = vpop.permute.xlu0 %1855 }
 0x1ea   : > { %v2741_v53 = vpop.eup %2740  ;;  %v3832_v9 = vadd.f32 %v1456_v35, %v1392_v39  ;;  %v3875_v25 = vpop.permute.xlu2 %1859 }
 0x1eb   : > { %1933 = vrot.lane.b32.xlu0 %v2741_v53, %s2914_s11  ;;  %v1465_v30 = vpop.f32.mrf.mxu2  ;;  %v1350_v39 = vpop.f32.mrf.mxu0  ;;  %v2629_v53 = vmul.f32 -1.442695, %v3828_v14 }
 0x1ec   : > { %2742 = vtanh.f32 %v3832_v9 }
 0x1ef   : > { %v1394_v57 = vpop.f32.mrf.mxu1 }
 0x1f0   : > { %v1395_v58 = vadd.f32 %v1394_v57, %v1330_v26  ;;  %v1351_v57 = vadd.f32 %v3822_v33, %v1350_v39 }
 0x1f2   : > { %v2743_v59 = vpop.eup %2742  ;;  %v3837_v11 = vadd.f32 %v1459_v38, %v1395_v58  ;;  %v3888_v46 = vpop.permute.xlu2 %1865 }
 0x1f3   : > { %1935 = vrot.lane.b32.xlu1 %v2743_v59, %s2914_s11  ;;  %v1468_v19 = vpop.f32.mrf.mxu2 }
 0x1f4   : > { %2744 = vtanh.f32 %v3837_v11  ;;  %v2631_v24 = vmul.f32 -1.442695, %v3837_v11  ;;  %v3892_v11 = vpop.permute.xlu0 %1861 }
 0x1f7   : > { %v1397_v16 = vpop.f32.mrf.mxu1 }
 0x1f8   : > { %v1398_v61 = vadd.f32 %v1397_v16, %v1333_v60  ;;  %v2630_v16 = vmul.f32 -1.442695, %v3832_v9 }
 0x1fa   : > { %v2745_v41 = vpop.eup %2744  ;;  %v3842_v0 = vadd.f32 %v1462_v37, %v1398_v61 }
 0x1fb   : > { %1937 = vrot.lane.b32.xlu2 %v2745_v41, %s2914_s11  ;;  %v1471_v63 = vpop.f32.mrf.mxu2 }
 0x1fc   : > { %2746 = vtanh.f32 %v3842_v0  ;;  %v2632_v61 = vmul.f32 -1.442695, %v3842_v0  ;;  %v3909_v0 = vpop.permute.xlu0 %1867 }
 0x1ff   : > { %v1400_v54 = vpop.f32.mrf.mxu1 }
 0x200   : > { %v1401_v1 = vadd.f32 %v1400_v54, %v1336_v28 }
 0x202   : > { %v2747_v3 = vpop.eup %2746  ;;  %v3847_v13 = vadd.f32 %v1465_v30, %v1401_v1  ;;  %v3903_v1 = vpop.permute.xlu2 %1871 }
 0x203   : > { %1939 = vrot.lane.b32.xlu0 %v2747_v3, %s2914_s11  ;;  %v1474_v22 = vpop.f32.mrf.mxu2 }
 0x204   : > { %2748 = vtanh.f32 %v3847_v13 }
 0x207   : > { %v1403_v4 = vpop.f32.mrf.mxu1 }
 0x208   : > { %v1404_v40 = vadd.f32 %v1403_v4, %v1339_v56  ;;  %v3912_v4 = vpop.permute.xlu1 %1863 }
 0x20a   : > { %v2749_v18 = vpop.eup %2748  ;;  %v1469_v55 = vadd.f32 %v1468_v19, %v1404_v40  ;;  %v1360_v19 = vadd.f32 %v3822_v33, %v3853_v15 }
 0x20b   : > { %1941 = vrot.lane.b32.xlu1 %v2749_v18, %s2914_s11  ;;  %v1353_v18 = vpop.f32.mrf.mxu0 }
 0x20c   : > { %2750 = vtanh.f32 %v1469_v55  ;;  %v2634_v59 = vmul.f32 -1.442695, %v1469_v55  ;;  %v2633_v55 = vmul.f32 -1.442695, %v3847_v13 }
 0x212   : > { %v2751_v17 = vpop.eup %2750  ;;  %v1424_v48 = vpop.f32.mrf.mxu3 }
 0x213   : > { %1943 = vrot.lane.b32.xlu2 %v2751_v17, %s2914_s11 }
 0x215   : > { %v1477_v23 = vpop.f32.mrf.mxu2 }
 0x217   : > { %v1406_v36 = vpop.f32.mrf.mxu1 }
 0x218   : > { %v1407_v12 = vadd.f32 %v1406_v36, %v1342_v34  ;;  %v1425_v36 = vadd.f32 %v1424_v48, %v1360_v19 }
 0x21a   : > { %v3859_v42 = vadd.f32 %v1471_v63, %v1407_v12  ;;  %v1354_v12 = vadd.f32 %v3822_v33, %v1353_v18 }
 0x21c   : > { %2752 = vtanh.f32 %v3859_v42 }
 0x222   : > { %v2753_v2 = vpop.eup %2752  ;;  %v3877_v35 = vpop.f32.mrf.mxu3 }
 0x223   : > { %1945 = vrot.lane.b32.xlu0 %v2753_v2, %s2914_s11 }
 0x225   : > { %v1480_v10 = vpop.f32.mrf.mxu2 }
 0x227   : > { %v1409_v5 = vpop.f32.mrf.mxu1 }
 0x228   : > { %v1410_v44 = vadd.f32 %v1409_v5, %v1345_v20  ;;  %v3930_v20 = vpop.permute.xlu2 %1877 }
 0x22a   : > { %v3868_v21 = vadd.f32 %v1474_v22, %v1410_v44  ;;  %v1369_v44 = vadd.f32 %v3822_v33, %v3866_v7 }
 0x22c   : > { %2754 = vtanh.f32 %v3868_v21 }
 0x232   : > { %v2755_v47 = vpop.eup %2754  ;;  %v3886_v26 = vpop.f32.mrf.mxu3 }
 0x233   : > { %1947 = vrot.lane.b32.xlu1 %v2755_v47, %s2914_s11 }
 0x235   : > { %v1483_v58 = vpop.f32.mrf.mxu2 }
 0x236   : > { %v1412_v51 = vpop.f32.mrf.mxu1 }
 0x237   : > { %v1413_v8 = vadd.f32 %v1412_v51, %v1348_v50  ;;  %v3945_v50 = vpop.permute.xlu0 %1873 }
 0x239   : > { %v3879_v52 = vadd.f32 %v1477_v23, %v1413_v8  ;;  %v3943_v23 = vpop.permute.xlu1 %1869  ;;  %v1363_v8 = vadd.f32 %v3822_v33, %v3856_v32 }
 0x23b   : > { %2756 = vtanh.f32 %v3879_v52 }
 0x23c   : > { %2758 = vpow2.f32 %v2631_v24 }
 0x23d   : > { %2760 = vpow2.f32 %v2629_v53  ;;  %v1356_v53 = vpop.f32.mrf.mxu0 }
 0x23e   : > { %2762 = vpow2.f32 %v2634_v59  ;;  %v1357_v32 = vadd.f32 %v3822_v33, %v1356_v53  ;;  %v2635_v53 = vmul.f32 -1.442695, %v3859_v42 }
 0x241   : > { %v2757_v38 = vpop.eup %2756 }
 0x242   : > { %1949 = vrot.lane.b32.xlu2 %v2757_v38, %s2914_s11  ;;  %v2759_v14 = vpop.eup %2758 }
 0x243   : > { %v2761_v30 = vpop.eup %2760  ;;  %v3901_v54 = vadd.f32 1.0, %v2759_v14 }
 0x244   : > { %v1433_v28 = vpop.f32.mrf.mxu3  ;;  %v3907_v9 = vadd.f32 1.0, %v2761_v30  ;;  %v2763_v27 = vpop.eup %2762 }
 0x245   : > { %v3921_v34 = vadd.f32 1.0, %v2763_v27  ;;  %v1434_v6 = vadd.f32 %v1433_v28, %v1369_v44  ;;  %v3971_v27 = vpop.permute.xlu2 %1883  ;;  %vm1600_vm15 = vweird.f32 %v3901_v54 }
 0x246   : > { %v1415_v37 = vpop.f32.mrf.mxu1  ;;  %vm1570_vm1 = vweird.f32 %v3907_v9  ;;  %v1574_v42 = vand.u32 2147483647, %v3907_v9 }
 0x247   : > { %v1416_v60 = vadd.f32 %v1415_v37, %v1351_v57  ;;  %vm1645_vm6 = vweird.f32 %v3921_v34 }
 0x248   : > { %vm1575_vm5 = vcmp.eq.f32.partialorder %v1574_v42, 8.507059e+37 }
 0x249   : > { %v3898_v41 = vadd.f32 %v1480_v10, %v1416_v60 }
 0x24b   : > { %2764 = vtanh.f32 %v3898_v41 }
 0x24c   : > { %2766 = vpow2.f32 %v2630_v16 }
 0x24d   : > { %2768 = vpow2.f32 %v2632_v61  ;;  %v3905_v3 = vpop.f32.mrf.mxu2 }
 0x24e   : > { %2770 = vrcp.f32 %v3901_v54 }
 0x24f   : > { %2772 = vrcp.f32 %v3907_v9 }
 0x250   : > { %2774 = vpow2.f32 %v2633_v55  ;;  %v3978_v55 = vpop.permute.xlu1 %1875 }
 0x251   : > { %v2765_v56 = vpop.eup %2764  ;;  %2776 = vrcp.f32 %v3921_v34 }
 0x252   : > { %v2767_v40 = vpop.eup %2766  ;;  %v3918_v17 = vpop.f32.mrf.mxu3  ;;  %1951 = vrot.lane.b32.xlu0 %v2765_v56, %s2914_s11 }
 0x253   : > { %v2769_v49 = vpop.eup %2768  ;;  %v3924_v63 = vadd.f32 1.0, %v2767_v40 }
 0x254   : > { %v3926_v43 = vpop.eup %2770  ;;  %v3928_v15 = vadd.f32 1.0, %v2769_v49  ;;  %v3980_v49 = vpop.permute.xlu0 %1879 }
 0x255   : > { %v1489_v2 = vpop.f32.mrf.mxu2  ;;  %v3937_v47 = vpop.eup %2772  ;;  %v1596_v48 = vmul.f32 %v3926_v43, %v3901_v54  ;;  %vm1601_vm13 = vweird.f32 %v3926_v43  ;;  %vm1585_vm12 = vweird.f32 %v3924_v63 }
 0x256   : > { %v3932_v13 = vadd.f32 %v1489_v2, %v1425_v36  ;;  %v1418_v5 = vpop.f32.mrf.mxu1  ;;  %v1566_v10 = vmul.f32 %v3937_v47, %v3907_v9  ;;  %v2775_v39 = vpop.eup %2774  ;;  %v1366_v2 = vadd.f32 %v3822_v33, %v3862_v29  ;;  %vm1571_vm14 = vweird.f32 %v3937_v47  ;;  %vm4004_vm0 = vmor %vm1600_vm15, %vm1601_vm13 }
 0x257   : > { %v1419_v22 = vadd.f32 %v1418_v5, %v1354_v12  ;;  %v3957_v38 = vpop.eup %2776  ;;  %v1597_v57 = vsub.f32 1.0, %v1596_v48  ;;  %v3969_v30 = vadd.f32 1.0, %v2775_v39  ;;  %v1606_v33 = vand.u32 2147483648, %v3901_v54  ;;  %vm4021_vm2 = vmor %vm1570_vm1, %vm1571_vm14 }
 0x258   : > { %2778 = vtanh.f32 %v3932_v13  ;;  %v1567_v16 = vsub.f32 1.0, %v1566_v10  ;;  %v1641_v40 = vmul.f32 %v3957_v38, %v3921_v34  ;;  %vm1646_vm4 = vweird.f32 %v3957_v38 }
 0x259   : > { %2780 = vrcp.f32 %v3924_v63  ;;  %v3947_v51 = vadd.f32 %v1483_v58, %v1419_v22  ;;  %v1428_v58 = vadd.f32 %v3877_v35, %v1363_v8  ;;  %v1598_v56 = vmul.f32 %v3926_v43, %v1597_v57  ;;  %vm4051_vm9 = vmor %vm1645_vm6, %vm1646_vm4 }
 0x25a   : > { %2782 = vrcp.f32 %v3928_v15  ;;  %v1498_v7 = vpop.f32.mrf.mxu3  ;;  %v1568_v18 = vmul.f32 %v3937_v47, %v1567_v16  ;;  %v1642_v48 = vsub.f32 1.0, %v1641_v40  ;;  %v1938_v16 = vpop.permute.xlu2 %1937  ;;  %vm1615_vm11 = vweird.f32 %v3928_v15 }
 0x25b   : > { %2784 = vtanh.f32 %v3947_v51  ;;  %v3955_v24 = vadd.f32 %v1498_v7, %v1434_v6  ;;  %v1599_v22 = vadd.f32 %v3926_v43, %v1598_v56  ;;  %v1604_v6 = vand.u32 2147483647, %v3901_v54 }
 0x25c   : > { %v1569_v29 = vadd.f32 %v3937_v47, %v1568_v18  ;;  %v1431_v7 = vadd.f32 %v3886_v26, %v1366_v2  ;;  %v1643_v54 = vmul.f32 %v3957_v38, %v1642_v48  ;;  %v1651_v2 = vand.u32 2147483648, %v3921_v34 }
 0x25d   : > { %v1492_v59 = vpop.f32.mrf.mxu2  ;;  %2786 = vtanh.f32 %v3955_v24  ;;  %vm1605_vm3 = vcmp.eq.f32.partialorder %v1604_v6, 8.507059e+37  ;;  %v1934_v18 = vpop.permute.xlu0 %1933 }
 0x25e   : > { %v2779_v37 = vpop.eup %2778  ;;  %v3964_v14 = vadd.f32 %v1492_v59, %v1428_v58  ;;  %v1421_v61 = vpop.f32.mrf.mxu1  ;;  %v1603_v58 = vsel %vm4004_vm0, %v3926_v43, %v1599_v22  ;;  %v4015_v26 = vadd.f32 %v3918_v17, %v1431_v7  ;;  %v1573_v17 = vsel %vm4021_vm2, %v3937_v47, %v1569_v29 }
 0x25f   : > { %v3961_v60 = vpop.eup %2780  ;;  %1957 = vrot.lane.b32.xlu0 %v2779_v37, %s2914_s11  ;;  %v1422_v19 = vadd.f32 %v1421_v61, %v1357_v32  ;;  %v1607_v32 = vor.u32 1.1754944e-38, %v1606_v33  ;;  %v4039_v47 = vpop.permute.xlu1 %1881 }
 0x260   : > { %v3967_v28 = vpop.eup %2782  ;;  %2788 = vtanh.f32 %v3964_v14  ;;  %v1581_v5 = vmul.f32 %v3961_v60, %v3924_v63  ;;  %vm1586_vm10 = vweird.f32 %v3961_v60 }
 0x261   : > { %v2785_v35 = vpop.eup %2784  ;;  %v3984_v36 = vadd.f32 %v3905_v3, %v1422_v19  ;;  %2790 = vrcp.f32 %v3969_v30  ;;  %v1611_v44 = vmul.f32 %v3967_v28, %v3928_v15  ;;  %v1576_v3 = vand.u32 2147483648, %v3907_v9  ;;  %vm4083_vm15 = vmor %vm1585_vm12, %vm1586_vm10 }
 0x262   : > { %1953 = vrot.lane.b32.xlu1 %v2785_v35, %s2914_s11  ;;  %v1582_v8 = vsub.f32 1.0, %v1581_v5  ;;  %v4031_v56 = vsel %vm1605_vm3, %v1607_v32, %v1603_v58  ;;  %v1644_v9 = vadd.f32 %v3957_v38, %v1643_v54  ;;  %vm1616_vm7 = vweird.f32 %v3967_v28 }
 0x263   : > { %v2787_v12 = vpop.eup %2786  ;;  %2792 = vtanh.f32 %v3984_v36  ;;  %v1612_v39 = vsub.f32 1.0, %v1611_v44  ;;  %v1577_v61 = vor.u32 1.1754944e-38, %v1576_v3  ;;  %v1983_v19 = vmul.f32 %v1938_v16, %v4031_v56  ;;  %vm4070_vm13 = vmor %vm1615_vm11, %vm1616_vm7 }
 0x264   : > { %v1583_v35 = vmul.f32 %v3961_v60, %v1582_v8  ;;  %2794 = vpow2.f32 %v2635_v53  ;;  %v1649_v44 = vand.u32 2147483647, %v3921_v34  ;;  %v2637_v3 = vmul.f32 -1.442695, %v3879_v52 }
 0x265   : > { %v1613_v40 = vmul.f32 %v3967_v28, %v1612_v39  ;;  %2796 = vtanh.f32 %v4015_v26  ;;  %v4044_v5 = vsel %vm1575_vm5, %v1577_v61, %v1573_v17  ;;  %v1621_v34 = vand.u32 2147483648, %v3928_v15 }
 0x266   : > { %v2789_v57 = vpop.eup %2788  ;;  %v1981_v33 = vmul.f32 %v1934_v18, %v4044_v5  ;;  %v1584_v29 = vadd.f32 %v3961_v60, %v1583_v35  ;;  %v1648_v6 = vsel %vm4051_vm9, %v3957_v38, %v1644_v9  ;;  %v1619_v8 = vand.u32 2147483647, %v3928_v15 }
 0x267   : > { %1963 = vrot.lane.b32.xlu0 %v2787_v12, %s2914_s11  ;;  %v4017_v59 = vpop.eup %2790  ;;  %v1614_v22 = vadd.f32 %v3967_v28, %v1613_v40  ;;  %v1652_v39 = vor.u32 1.1754944e-38, %v1651_v2  ;;  %vm1650_vm14 = vcmp.eq.f32.partialorder %v1649_v44, 8.507059e+37  ;;  %v1589_v38 = vand.u32 2147483647, %v3924_v63  ;;  %v1936_v35 = vpop.permute.xlu1 %1935 }
 0x268   : > { %v1626_v12 = vmul.f32 %v4017_v59, %v3969_v30  ;;  %2798 = vpow2.f32 %v2637_v3  ;;  %v1622_v42 = vor.u32 1.1754944e-38, %v1621_v34  ;;  %vm1620_vm0 = vcmp.eq.f32.partialorder %v1619_v8, 8.507059e+37 }
 0x269   : > { %v2793_v43 = vpop.eup %2792  ;;  %v1618_v15 = vsel %vm4070_vm13, %v3967_v28, %v1614_v22  ;;  %v4078_v54 = vsel %vm1650_vm14, %v1652_v39, %v1648_v6  ;;  %v1588_v28 = vsel %vm4083_vm15, %v3961_v60, %v1584_v29  ;;  %vm1590_vm1 = vcmp.eq.f32.partialorder %v1589_v38, 8.507059e+37 }
 0x26a   : > { %1959 = vrot.lane.b32.xlu1 %v2789_v57, %s2914_s11  ;;  %1955 = vrot.lane.b32.xlu2 %v2793_v43, %s2914_s11  ;;  %v2795_v7 = vpop.eup %2794  ;;  %v1627_v10 = vsub.f32 1.0, %v1626_v12  ;;  %v1591_v57 = vand.u32 2147483648, %v3924_v63  ;;  %v4092_v61 = vsel %vm1620_vm0, %v1622_v42, %v1618_v15  ;;  %v2636_v40 = vmul.f32 -1.442695, %v3868_v21 }
 0x26b   : > { %v2797_v53 = vpop.eup %2796  ;;  %v1555_v32 = vadd.f32 1.0, %v2795_v7  ;;  %vm1631_vm2 = vweird.f32 %v4017_v59  ;;  %v1636_v2 = vand.u32 2147483648, %v3969_v30  ;;  %vm1630_vm3 = vweird.f32 %v3969_v30 }
 0x26c   : > { %v1628_v43 = vmul.f32 %v4017_v59, %v1627_v10  ;;  %v1592_v17 = vor.u32 1.1754944e-38, %v1591_v57  ;;  %v1634_v21 = vand.u32 2147483647, %v3969_v30  ;;  %vm1632_vm4 = vmor %vm1630_vm3, %vm1631_vm2 }
 0x26d   : > { %v1944_v52 = vpop.permute.xlu2 %1943  ;;  %2800 = vrcp.f32 %v1555_v32  ;;  %v1637_v3 = vor.u32 1.1754944e-38, %v1636_v2  ;;  %v1666_v58 = vand.u32 2147483648, %v1555_v32  ;;  %vm1660_vm7 = vweird.f32 %v1555_v32 }
 0x26e   : > { %v1986_v16 = vmul.f32 %v1944_v52, %v4078_v54  ;;  %v2799_v18 = vpop.eup %2798  ;;  %v1629_v60 = vadd.f32 %v4017_v59, %v1628_v43  ;;  %2802 = vpow2.f32 %v2636_v40  ;;  %vm1635_vm5 = vcmp.eq.f32.partialorder %v1634_v21, 8.507059e+37 }
 0x26f   : > { %2017 = vrot.lane.b32.xlu0 %v1983_v19, %s2914_s11  ;;  %v4097_v19 = vsel %vm1590_vm1, %v1592_v17, %v1588_v28  ;;  %v1557_v44 = vadd.f32 1.0, %v2799_v18  ;;  %v1664_v38 = vand.u32 2147483647, %v1555_v32  ;;  %v2638_v40 = vmul.f32 -1.442695, %v3898_v41 }
 0x270   : > { %v1982_v12 = vmul.f32 %v1936_v35, %v4097_v19  ;;  %v1633_v22 = vsel %vm1632_vm4, %v4017_v59, %v1629_v60 }
 0x271   : > { %v4108_v29 = vsel %vm1635_vm5, %v1637_v3, %v1633_v22  ;;  %2804 = vrcp.f32 %v1557_v44  ;;  %vm1665_vm10 = vcmp.eq.f32.partialorder %v1664_v38, 8.507059e+37  ;;  %vm1690_vm12 = vweird.f32 %v1557_v44 }
 0x272   : > { %2013 = vrot.lane.b32.xlu1 %v1981_v33, %s2914_s11  ;;  %1961 = vrot.lane.b32.xlu2 %v2797_v53, %s2914_s11  ;;  %v1694_v18 = vand.u32 2147483647, %v1557_v44 }
 0x273   : > { %v2801_v48 = vpop.eup %2800 }
 0x274   : > { %v2803_v34 = vpop.eup %2802  ;;  %v1656_v6 = vmul.f32 %v2801_v48, %v1555_v32  ;;  %vm1661_vm6 = vweird.f32 %v2801_v48  ;;  %vm1695_vm14 = vcmp.eq.f32.partialorder %v1694_v18, 8.507059e+37 }
 0x275   : > { %v1940_v63 = vpop.permute.xlu0 %1939  ;;  %v1556_v30 = vadd.f32 1.0, %v2803_v34  ;;  %vm1662_vm9 = vmor %vm1660_vm7, %vm1661_vm6 }
 0x276   : > { %v1984_v9 = vmul.f32 %v1940_v63, %v4092_v61  ;;  %v1657_v8 = vsub.f32 1.0, %v1656_v6 }
 0x277   : > { %2023 = vrot.lane.b32.xlu0 %v1986_v16, %s2914_s11  ;;  %v2805_v10 = vpop.eup %2804  ;;  %2806 = vrcp.f32 %v1556_v30  ;;  %v1667_v16 = vor.u32 1.1754944e-38, %v1666_v58  ;;  %v1681_v3 = vand.u32 2147483648, %v1556_v30  ;;  %vm1675_vm0 = vweird.f32 %v1556_v30 }
 0x278   : > { %v1658_v39 = vmul.f32 %v2801_v48, %v1657_v8  ;;  %v1686_v52 = vmul.f32 %v2805_v10, %v1557_v44  ;;  %vm1691_vm11 = vweird.f32 %v2805_v10  ;;  %2808 = vpow2.f32 %v2638_v40 }
 0x279   : > { %vm1692_vm13 = vmor %vm1690_vm12, %vm1691_vm11  ;;  %v1679_v41 = vand.u32 2147483647, %v1556_v30  ;;  %v1682_v6 = vor.u32 1.1754944e-38, %v1681_v3  ;;  %v2642_v58 = vmul.f32 -1.442695, %v3964_v14 }
 0x27a   : > { %2019 = vrot.lane.b32.xlu1 %v1984_v9, %s2914_s11  ;;  %2015 = vrot.lane.b32.xlu2 %v1982_v12, %s2914_s11  ;;  %v1659_v59 = vadd.f32 %v2801_v48, %v1658_v39  ;;  %v1687_v53 = vsub.f32 1.0, %v1686_v52  ;;  %v1696_v9 = vand.u32 2147483648, %v1557_v44  ;;  %v2639_v52 = vmul.f32 -1.442695, %v3947_v51 }
 0x27b   : > { %vm1680_vm2 = vcmp.eq.f32.partialorder %v1679_v41, 8.507059e+37 }
 0x27c   : > { %v1663_v15 = vsel %vm1662_vm9, %v2801_v48, %v1659_v59  ;;  %v1688_v42 = vmul.f32 %v2805_v10, %v1687_v53  ;;  %v1697_v12 = vor.u32 1.1754944e-38, %v1696_v9 }
 0x27d   : > { %v1942_v33 = vpop.permute.xlu1 %1941  ;;  %v2807_v57 = vpop.eup %2806  ;;  %v4112_v63 = vsel %vm1665_vm10, %v1667_v16, %v1663_v15 }
 0x27e   : > { %v1985_v7 = vmul.f32 %v1942_v33, %v4108_v29  ;;  %v1671_v37 = vmul.f32 %v2807_v57, %v1556_v30  ;;  %v1689_v17 = vadd.f32 %v2805_v10, %v1688_v42  ;;  %vm1676_vm15 = vweird.f32 %v2807_v57  ;;  %v2809_v44 = vpop.eup %2808 }
 0x27f   : > { %vm1677_vm1 = vmor %vm1675_vm0, %vm1676_vm15  ;;  %v2643_v33 = vmul.f32 -1.442695, %v4015_v26  ;;  %v2640_v30 = vmul.f32 -1.442695, %v3984_v36  ;;  %v2644_v26 = vmul.f32 -1.442695, %v3955_v24 }
 0x280   : > { %v1672_v43 = vsub.f32 1.0, %v1671_v37  ;;  %v1693_v60 = vsel %vm1692_vm13, %v2805_v10, %v1689_v17  ;;  %v2641_v37 = vmul.f32 -1.442695, %v3932_v13 }
 0x281   : > { %v4117_v2 = vsel %vm1695_vm14, %v1697_v12, %v1693_v60  ;;  %2810 = vpow2.f32 %v2643_v33 }
 0x282   : > { %2021 = vrot.lane.b32.xlu2 %v1985_v7, %s2914_s11  ;;  %v1673_v32 = vmul.f32 %v2807_v57, %v1672_v43  ;;  %v1558_v7 = vadd.f32 1.0, %v2809_v44 }
 0x284   : > { %v1674_v22 = vadd.f32 %v2807_v57, %v1673_v32  ;;  %2812 = vrcp.f32 %v1558_v7  ;;  %v1711_v32 = vand.u32 2147483648, %v1558_v7  ;;  %vm1705_vm4 = vweird.f32 %v1558_v7 }
 0x285   : > { %2814 = vpow2.f32 %v2639_v52  ;;  %v1709_v12 = vand.u32 2147483647, %v1558_v7 }
 0x286   : > { %v1678_v34 = vsel %vm1677_vm1, %v2807_v57, %v1674_v22  ;;  %2816 = vpow2.f32 %v2640_v30  ;;  %v1712_v41 = vor.u32 1.1754944e-38, %v1711_v32 }
 0x287   : > { %v4122_v8 = vsel %vm1680_vm2, %v1682_v6, %v1678_v34  ;;  %v2811_v59 = vpop.eup %2810  ;;  %2818 = vpow2.f32 %v2644_v26  ;;  %vm1710_vm6 = vcmp.eq.f32.partialorder %v1709_v12, 8.507059e+37 }
 0x288   : > { %v4129_v57 = vadd.f32 1.0, %v2811_v59 }
 0x28a   : > { %v2813_v53 = vpop.eup %2812  ;;  %2820 = vrcp.f32 %v4129_v57  ;;  %vm1780_vm9 = vweird.f32 %v4129_v57 }
 0x28b   : > { %v2815_v38 = vpop.eup %2814  ;;  %v1701_v15 = vmul.f32 %v2813_v53, %v1558_v7  ;;  %2822 = vpow2.f32 %v2642_v58  ;;  %vm1706_vm3 = vweird.f32 %v2813_v53  ;;  %v1784_v58 = vand.u32 2147483647, %v4129_v57 }
 0x28c   : > { %v2817_v51 = vpop.eup %2816  ;;  %v4134_v36 = vadd.f32 1.0, %v2815_v38  ;;  %2824 = vpow2.f32 %v2641_v37  ;;  %vm1707_vm5 = vmor %vm1705_vm4, %vm1706_vm3  ;;  %v1786_v38 = vand.u32 2147483648, %v4129_v57 }
 0x28d   : > { %v1702_v42 = vsub.f32 1.0, %v1701_v15  ;;  %v2819_v16 = vpop.eup %2818  ;;  %v4136_v24 = vadd.f32 1.0, %v2817_v51  ;;  %vm1785_vm11 = vcmp.eq.f32.partialorder %v1784_v58, 8.507059e+37 }
 0x28e   : > { %2826 = vrcp.f32 %v4134_v36  ;;  %v4139_v43 = vadd.f32 1.0, %v2819_v16  ;;  %vm1720_vm12 = vweird.f32 %v4134_v36 }
 0x28f   : > { %v1703_v17 = vmul.f32 %v2813_v53, %v1702_v42  ;;  %2828 = vrcp.f32 %v4136_v24  ;;  %vm1735_vm0 = vweird.f32 %v4136_v24 }
 0x290   : > { %2830 = vrcp.f32 %v4139_v43  ;;  %vm1795_vm4 = vweird.f32 %v4139_v43 }
 0x291   : > { %v1704_v9 = vadd.f32 %v2813_v53, %v1703_v17  ;;  %v1787_v17 = vor.u32 1.1754944e-38, %v1786_v38 }
 0x295   : > { %v1946_v28 = vpop.permute.xlu0 %1945 }
 0x296   : > { %v1987_v35 = vmul.f32 %v1946_v28, %v4112_v63  ;;  %v2821_v28 = vpop.eup %2820 }
 0x297   : > { %v2823_v14 = vpop.eup %2822  ;;  %vm1781_vm7 = vweird.f32 %v2821_v28 }
 0x298   : > { %2025 = vrot.lane.b32.xlu1 %v1987_v35, %s2914_s11  ;;  %v1776_v35 = vmul.f32 %v2821_v28, %v4129_v57  ;;  %v4143_v13 = vadd.f32 1.0, %v2823_v14  ;;  %v2825_v40 = vpop.eup %2824  ;;  %vm1782_vm10 = vmor %vm1780_vm9, %vm1781_vm7 }
 0x299   : > { %v4146_v18 = vpop.eup %2826  ;;  %v4151_v22 = vadd.f32 1.0, %v2825_v40 }
 0x29a   : > { %v1777_v60 = vsub.f32 1.0, %v1776_v35  ;;  %2832 = vrcp.f32 %v4143_v13  ;;  %v1716_v3 = vmul.f32 %v4146_v18, %v4134_v36  ;;  %vm1721_vm13 = vweird.f32 %v4146_v18 }
 0x29b   : > { %2834 = vrcp.f32 %v4151_v22  ;;  %vm4195_vm15 = vmor %vm1720_vm12, %vm1721_vm13 }
 0x29c   : > { %v1950_v21 = vpop.permute.xlu2 %1949  ;;  %v1778_v33 = vmul.f32 %v2821_v28, %v1777_v60  ;;  %v1726_v60 = vand.u32 2147483648, %v4134_v36 }
 0x29d   : > { %v1989_v48 = vmul.f32 %v1950_v21, %v4117_v2  ;;  %v4148_v21 = vpop.eup %2828 }
 0x29e   : > { %v4155_v44 = vpop.eup %2830  ;;  %v1731_v34 = vmul.f32 %v4148_v21, %v4136_v24  ;;  %v1779_v26 = vadd.f32 %v2821_v28, %v1778_v33  ;;  %vm1736_vm14 = vweird.f32 %v4148_v21  ;;  %v1741_v33 = vand.u32 2147483648, %v4136_v24 }
 0x29f   : > { %2029 = vrot.lane.b32.xlu0 %v1989_v48, %s2914_s11  ;;  %v1708_v48 = vsel %vm1707_vm5, %v2813_v53, %v1704_v9  ;;  %v1791_v59 = vmul.f32 %v4155_v44, %v4139_v43  ;;  %vm4206_vm1 = vmor %vm1735_vm0, %vm1736_vm14  ;;  %vm1796_vm2 = vweird.f32 %v4155_v44  ;;  %vm1765_vm5 = vweird.f32 %v4143_v13 }
 0x2a0   : > { %v4159_v6 = vsel %vm1710_vm6, %v1712_v41, %v1708_v48  ;;  %v4163_v52 = vpop.eup %2832  ;;  %v1732_v53 = vsub.f32 1.0, %v1731_v34  ;;  %v1783_v16 = vsel %vm1782_vm10, %v2821_v28, %v1779_v26  ;;  %v1902_v41 = vmul.f32 %v3883_v31, %v4097_v19  ;;  %vm4222_vm7 = vmor %vm1795_vm4, %vm1796_vm2 }
 0x2a1   : > { %v1761_v51 = vmul.f32 %v4163_v52, %v4143_v13  ;;  %v1792_v37 = vsub.f32 1.0, %v1791_v59  ;;  %v4176_v42 = vpop.eup %2834  ;;  %v4182_v40 = vsel %vm1785_vm11, %v1787_v17, %v1783_v16  ;;  %v1727_v26 = vor.u32 1.1754944e-38, %v1726_v60 }
 0x2a2   : > { %v1733_v14 = vmul.f32 %v4148_v21, %v1732_v53  ;;  %v1746_v32 = vmul.f32 %v4176_v42, %v4151_v22  ;;  %v1742_v58 = vor.u32 1.1754944e-38, %v1741_v33  ;;  %vm1766_vm9 = vweird.f32 %v4163_v52 }
 0x2a3   : > { %v1762_v57 = vsub.f32 1.0, %v1761_v51  ;;  %v1793_v28 = vmul.f32 %v4155_v44, %v1792_v37  ;;  %v1799_v51 = vand.u32 2147483647, %v4139_v43  ;;  %vm4241_vm11 = vmor %vm1765_vm5, %vm1766_vm9  ;;  %vm1751_vm12 = vweird.f32 %v4176_v42 }
 0x2a4   : > { %v1734_v12 = vadd.f32 %v4148_v21, %v1733_v14  ;;  %v1747_v59 = vsub.f32 1.0, %v1746_v32  ;;  %v1756_v33 = vand.u32 2147483648, %v4151_v22  ;;  %vm1750_vm14 = vweird.f32 %v4151_v22 }
 0x2a5   : > { %v1948_v10 = vpop.permute.xlu1 %1947  ;;  %v1794_v53 = vadd.f32 %v4155_v44, %v1793_v28  ;;  %v1769_v28 = vand.u32 2147483647, %v4143_v13  ;;  %vm1800_vm10 = vcmp.eq.f32.partialorder %v1799_v51, 8.507059e+37  ;;  %v1754_v34 = vand.u32 2147483647, %v4151_v22 }
 0x2a6   : > { %v1988_v39 = vmul.f32 %v1948_v10, %v4122_v8  ;;  %v1748_v17 = vmul.f32 %v4176_v42, %v1747_v59  ;;  %v1757_v59 = vor.u32 1.1754944e-38, %v1756_v33 }
 0x2a7   : > { %vm1770_vm13 = vcmp.eq.f32.partialorder %v1769_v28, 8.507059e+37  ;;  %vm1755_vm0 = vcmp.eq.f32.partialorder %v1754_v34, 8.507059e+37 }
 0x2a8   : > { %2027 = vrot.lane.b32.xlu2 %v1988_v39, %s2914_s11  ;;  %v1717_v39 = vsub.f32 1.0, %v1716_v3  ;;  %v1724_v3 = vand.u32 2147483647, %v4134_v36 }
 0x2aa   : > { %v1718_v15 = vmul.f32 %v4146_v18, %v1717_v39  ;;  %v1763_v39 = vmul.f32 %v4163_v52, %v1762_v57  ;;  %vm1725_vm3 = vcmp.eq.f32.partialorder %v1724_v3, 8.507059e+37  ;;  %v1771_v57 = vand.u32 2147483648, %v4143_v13 }
 0x2ab   : > { %v1749_v3 = vadd.f32 %v4176_v42, %v1748_v17 }
 0x2ac   : > { %v1719_v35 = vadd.f32 %v4146_v18, %v1718_v15 }
 0x2ae   : > { %v1723_v36 = vsel %vm4195_vm15, %v4146_v18, %v1719_v35  ;;  %v1801_v18 = vand.u32 2147483648, %v4139_v43  ;;  %v1798_v43 = vsel %vm4222_vm7, %v4155_v44, %v1794_v53  ;;  %vm1752_vm15 = vmor %vm1750_vm14, %vm1751_vm12  ;;  %v1901_v53 = vmul.f32 %v3871_v45, %v4044_v5 }
 0x2af   : > { %v4217_v38 = vsel %vm1725_vm3, %v1727_v26, %v1723_v36 }
 0x2b0   : > { %v1802_v60 = vor.u32 1.1754944e-38, %v1801_v18  ;;  %v1905_v18 = vmul.f32 %v3892_v11, %v4108_v29  ;;  %v1911_v33 = vmul.f32 %v3945_v50, %v4217_v38 }
 0x2b2   : > { %v4245_v44 = vsel %vm1800_vm10, %v1802_v60, %v1798_v43  ;;  %v1906_v43 = vmul.f32 %v3912_v4, %v4078_v54  ;;  %v1907_v4 = vmul.f32 %v3888_v46, %v4112_v63 }
 0x2c4   : > { %v1952_v7 = vpop.permute.xlu0 %1951  ;;  %v4165_v30 = vpop.permute.xlu2 %1955 }
 0x2c5   : > { %v1990_v10 = vmul.f32 %v1952_v7, %v4159_v6  ;;  %v1739_v7 = vand.u32 2147483647, %v4136_v24  ;;  %v1738_v24 = vsel %vm4206_vm1, %v4148_v21, %v1734_v12  ;;  %v1764_v21 = vadd.f32 %v4163_v52, %v1763_v39 }
 0x2c6   : > { %v1753_v39 = vsel %vm1752_vm15, %v4176_v42, %v1749_v3 }
 0x2c7   : > { %2031 = vrot.lane.b32.xlu1 %v1990_v10, %s2914_s11  ;;  %vm1740_vm6 = vcmp.eq.f32.partialorder %v1739_v7, 8.507059e+37  ;;  %v4263_v26 = vsel %vm1755_vm0, %v1757_v59, %v1753_v39 }
 0x2c8   : > { %v4228_v14 = vsel %vm1740_vm6, %v1742_v58, %v1738_v24 }
 0x2cc   : > { %v1962_v9 = vpop.permute.xlu2 %1961 }
 0x2cd   : > { %v1995_v48 = vmul.f32 %v1962_v9, %v4182_v40  ;;  %v1992_v9 = vmul.f32 %v4165_v30, %v4228_v14  ;;  %v1768_v30 = vsel %vm4241_vm11, %v4163_v52, %v1764_v21  ;;  %v1904_v21 = vmul.f32 %v3875_v25, %v4092_v61 }
 0x2ce   : > { %v1908_v25 = vmul.f32 %v3909_v0, %v4122_v8  ;;  %v1909_v0 = vmul.f32 %v3943_v23, %v4117_v2  ;;  %v1910_v23 = vmul.f32 %v3903_v1, %v4159_v6 }
 0x2cf   : > { %2041 = vrot.lane.b32.xlu0 %v1995_v48, %s2914_s11 }
 0x2d1   : > { %v1958_v10 = vpop.permute.xlu0 %1957 }
 0x2d2   : > { %v1993_v22 = vmul.f32 %v1958_v10, %v4263_v26 }
 0x2d4   : > { %v1954_v15 = vpop.permute.xlu1 %1953  ;;  %v2016_v35 = vpop.permute.xlu2 %2015 }
 0x2d5   : > { %v1991_v37 = vmul.f32 %v1954_v15, %v4217_v38  ;;  %v2062_v32 = vadd.f32 %v2016_v35, %v1902_v41  ;;  %v1772_v41 = vor.u32 1.1754944e-38, %v1771_v57  ;;  %v1903_v15 = vmul.f32 %v3896_v62, %v4031_v56 }
 0x2d7   : > { %2033 = vrot.lane.b32.xlu2 %v1991_v37, %s2914_s11  ;;  %2836 = vtanh.f32 %v2062_v32  ;;  %2035 = vrot.lane.b32.xlu0 %v1992_v9, %s2914_s11  ;;  %v4258_v7 = vsel %vm1770_vm13, %v1772_v41, %v1768_v30 }
 0x2d9   : > { %v1964_v48 = vpop.permute.xlu0 %1963 }
 0x2da   : > { %v1996_v13 = vmul.f32 %v1964_v48, %v4245_v44 }
 0x2dc   : > { %2043 = vrot.lane.b32.xlu1 %v1996_v13, %s2914_s11  ;;  %v1960_v36 = vpop.permute.xlu1 %1959  ;;  %v2022_v24 = vpop.permute.xlu2 %2021 }
 0x2dd   : > { %v1994_v52 = vmul.f32 %v1960_v36, %v4258_v7  ;;  %v2837_v31 = vpop.eup %2836  ;;  %v2065_v37 = vadd.f32 %v2022_v24, %v1905_v18  ;;  %v1914_v18 = vmul.f32 %v3980_v49, %v4258_v7 }
 0x2df   : > { %2039 = vrot.lane.b32.xlu2 %v1994_v52, %s2914_s11  ;;  %2111 = vrot.lane.b32.xlu0 %v2837_v31, %s2914_s11 }
 0x2e1   : > { %v2018_v58 = vpop.permute.xlu0 %2017 }
 0x2e2   : > { %v2063_v16 = vadd.f32 %v2018_v58, %v1903_v15  ;;  %v1912_v58 = vmul.f32 %v3978_v55, %v4228_v14 }
 0x2e4   : > { %2037 = vrot.lane.b32.xlu1 %v1993_v22, %s2914_s11  ;;  %v2014_v42 = vpop.permute.xlu1 %2013  ;;  %v1915_v22 = vmul.f32 %v4039_v47, %v4182_v40 }
 0x2e5   : > { %v2061_v51 = vadd.f32 %v2014_v42, %v1901_v53 }
 0x2e7   : > { %2838 = vtanh.f32 %v2061_v51  ;;  %2273 = vrot.lane.b32.xlu0 %v2063_v16, %s2916_s14 }
 0x2e8   : > { %2840 = vtanh.f32 %v2065_v37 }
 0x2e9   : > { %2842 = vtanh.f32 %v2063_v16  ;;  %v2024_v35 = vpop.permute.xlu0 %2023 }
 0x2ea   : > { %v2066_v57 = vadd.f32 %v2024_v35, %v1906_v43 }
 0x2ec   : > { %2269 = vrot.lane.b32.xlu1 %v2061_v51, %s2916_s14  ;;  %v2020_v10 = vpop.permute.xlu1 %2019 }
 0x2ed   : > { %v2839_v45 = vpop.eup %2838  ;;  %v2064_v17 = vadd.f32 %v2020_v10, %v1904_v21 }
 0x2ee   : > { %2109 = vrot.lane.b32.xlu2 %v2839_v45, %s2914_s11  ;;  %v2841_v11 = vpop.eup %2840 }
 0x2ef   : > { %2117 = vrot.lane.b32.xlu0 %v2841_v11, %s2914_s11  ;;  %v2843_v62 = vpop.eup %2842  ;;  %2844 = vtanh.f32 %v2064_v17 }
 0x2f0   : > { %2846 = vtanh.f32 %v2066_v57 }
 0x2f4   : > { %2113 = vrot.lane.b32.xlu1 %v2843_v62, %s2914_s11  ;;  %v1913_v62 = vmul.f32 %v3930_v20, %v4263_v26 }
 0x2f5   : > { %v2845_v9 = vpop.eup %2844 }
 0x2f6   : > { %2271 = vrot.lane.b32.xlu2 %v2062_v32, %s2916_s14  ;;  %v2847_v28 = vpop.eup %2846 }
 0x2f7   : > { %2279 = vrot.lane.b32.xlu0 %v2066_v57, %s2916_s14 }
 0x2fc   : > { %2275 = vrot.lane.b32.xlu1 %v2064_v17, %s2916_s14 }
 0x2fe   : > { %2115 = vrot.lane.b32.xlu2 %v2845_v9, %s2914_s11 }
 0x302   : > { %v2028_v60 = vpop.permute.xlu2 %2027 }
 0x303   : > { %v2068_v12 = vadd.f32 %v2028_v60, %v1908_v25 }
 0x304   : > { %2119 = vrot.lane.b32.xlu1 %v2847_v28, %s2914_s11 }
 0x305   : > { %2848 = vtanh.f32 %v2068_v12 }
 0x306   : > { %2277 = vrot.lane.b32.xlu2 %v2065_v37, %s2916_s14  ;;  %v1916_v37 = vmul.f32 %v3971_v27, %v4245_v44 }
 0x30a   : > { %v2026_v32 = vpop.permute.xlu1 %2025 }
 0x30b   : > { %v2849_v48 = vpop.eup %2848  ;;  %v2067_v30 = vadd.f32 %v2026_v32, %v1907_v4 }
 0x30c   : > { %2123 = vrot.lane.b32.xlu0 %v2849_v48, %s2914_s11 }
 0x30d   : > { %2850 = vtanh.f32 %v2067_v30  ;;  %2281 = vrot.lane.b32.xlu1 %v2067_v30, %s2916_s14 }
 0x311   : > { %v2030_v3 = vpop.permute.xlu0 %2029 }
 0x312   : > { %v2069_v41 = vadd.f32 %v2030_v3, %v1909_v0 }
 0x313   : > { %v2851_v13 = vpop.eup %2850 }
 0x314   : > { %2121 = vrot.lane.b32.xlu2 %v2851_v13, %s2914_s11  ;;  %2852 = vtanh.f32 %v2069_v41  ;;  %2285 = vrot.lane.b32.xlu0 %v2069_v41, %s2916_s14 }
 0x31a   : > { %v2853_v46 = vpop.eup %2852 }
 0x31b   : > { %2125 = vrot.lane.b32.xlu1 %v2853_v46, %s2914_s11 }
 0x31c   : > { %2283 = vrot.lane.b32.xlu2 %v2068_v12, %s2916_s14 }
 0x331   : > { %v2034_v34 = vpop.permute.xlu2 %2033 }
 0x332   : > { %v2071_v36 = vadd.f32 %v2034_v34, %v1911_v33 }
 0x334   : > { %2854 = vtanh.f32 %v2071_v36 }
 0x339   : > { %v2032_v52 = vpop.permute.xlu1 %2031  ;;  %v2040_v59 = vpop.permute.xlu2 %2039 }
 0x33a   : > { %v2855_v39 = vpop.eup %2854  ;;  %v2070_v31 = vadd.f32 %v2032_v52, %v1910_v23  ;;  %v4316_v42 = vadd.f32 %v2040_v59, %v1914_v18 }
 0x33b   : > { %2129 = vrot.lane.b32.xlu0 %v2855_v39, %s2914_s11 }
 0x33c   : > { %2856 = vtanh.f32 %v2070_v31 }
 0x341   : > { %v2042_v24 = vpop.permute.xlu0 %2041 }
 0x342   : > { %v2857_v53 = vpop.eup %2856  ;;  %v4308_v50 = vadd.f32 %v2042_v24, %v1915_v22 }
 0x343   : > { %2127 = vrot.lane.b32.xlu2 %v2857_v53, %s2914_s11 }
 0x344   : > { %2858 = vtanh.f32 %v4308_v50 }
 0x345   : > { %2860 = vtanh.f32 %v4316_v42 }
 0x348   : > { %v2110_v1 = vpop.permute.xlu2 %2109 }
 0x349   : > { %v2036_v15 = vpop.permute.xlu0 %2035  ;;  %v2157_v43 = vmul.f32 %v2110_v1, %v4044_v5 }
 0x34a   : > { %v2859_v47 = vpop.eup %2858  ;;  %v2072_v51 = vadd.f32 %v2036_v15, %v1912_v58 }
 0x34b   : > { %2137 = vrot.lane.b32.xlu1 %v2859_v47, %s2914_s11  ;;  %v2861_v45 = vpop.eup %2860 }
 0x34c   : > { %2291 = vrot.lane.b32.xlu0 %v2072_v51, %s2916_s14 }
 0x34e   : > { %v2044_v16 = vpop.permute.xlu1 %2043 }
 0x34f   : > { %v4329_v55 = vadd.f32 %v2044_v16, %v1916_v37 }
 0x350   : > { %v2272_v49 = vpop.permute.xlu2 %2271 }
 0x351   : > { %2862 = vtanh.f32 %v4329_v55  ;;  %2318 = vst.msk [vmem:[%s4326_s17 + $0x8] sm:$0xff] %vm1031_vm8, %v2272_v49  ;;  %v2112_v27 = vpop.permute.xlu0 %2111 }
 0x352   : > { %2864 = vtanh.f32 %v2072_v51  ;;  %v2158_v12 = vmul.f32 %v2112_v27, %v4097_v19 }
 0x353   : > { %2287 = vrot.lane.b32.xlu1 %v2070_v31, %s2916_s14 }
 0x354   : > { %2135 = vrot.lane.b32.xlu0 %v2861_v45, %s2914_s11 }
 0x356   : > { %v2038_v11 = vpop.permute.xlu1 %2037 }
 0x357   : > { %v2863_v10 = vpop.eup %2862  ;;  %v2073_v57 = vadd.f32 %v2038_v11, %v1913_v62 }
 0x358   : > { %2139 = vrot.lane.b32.xlu2 %v2863_v10, %s2914_s11  ;;  %v2116_v21 = vpop.permute.xlu2 %2115  ;;  %v2865_v35 = vpop.eup %2864 }
 0x359   : > { %v2274_v17 = vpop.permute.xlu0 %2273  ;;  %2866 = vtanh.f32 %v2073_v57  ;;  %v2160_v5 = vmul.f32 %v2116_v21, %v4092_v61 }
 0x35a   : > { %2319 = vst.msk [vmem:[%s4326_s17 + $0x10] sm:$0xff] %vm1031_vm8, %v2274_v17 }
 0x35b   : > { %2131 = vrot.lane.b32.xlu1 %v2865_v35, %s2914_s11 }
 0x35c   : > { %2189 = vrot.lane.b32.xlu0 %v2157_v43, %s2917_s25 }
 0x35e   : > { %v2270_v9 = vpop.permute.xlu1 %2269 }
 0x35f   : > { %2317 = vst.msk [vmem:[%s4326_s17] sm:$0xff] %vm1031_vm8, %v2270_v9  ;;  %v2867_v28 = vpop.eup %2866 }
 0x360   : > { %2289 = vrot.lane.b32.xlu2 %v2071_v36, %s2916_s14  ;;  %v2278_v25 = vpop.permute.xlu2 %2277 }
 0x361   : > { %2321 = vst.msk [vmem:[%s4326_s17 + $0x20] sm:$0xff] %vm1031_vm8, %v2278_v25  ;;  %v2118_v20 = vpop.permute.xlu0 %2117 }
 0x362   : > { %v2161_v19 = vmul.f32 %v2118_v20, %v4108_v29 }
 0x363   : > { %2293 = vrot.lane.b32.xlu1 %v2073_v57, %s2916_s14 }
 0x364   : > { %2195 = vrot.lane.b32.xlu0 %v2160_v5, %s2917_s25 }
 0x366   : > { %v2114_v60 = vpop.permute.xlu1 %2113 }
 0x367   : > { %v2159_v32 = vmul.f32 %v2114_v60, %v4031_v56 }
 0x368   : > { %2133 = vrot.lane.b32.xlu2 %v2867_v28, %s2914_s11 }
 0x369   : > { %v2280_v4 = vpop.permute.xlu0 %2279 }
 0x36a   : > { %2322 = vst.msk [vmem:[%s4326_s17 + $0x28] sm:$0xff] %vm1031_vm8, %v2280_v4 }
 0x36b   : > { %2191 = vrot.lane.b32.xlu1 %v2158_v12, %s2917_s25 }
 0x36e   : > { %v2276_v48 = vpop.permute.xlu1 %2275  ;;  %v2122_v61 = vpop.permute.xlu2 %2121 }
 0x36f   : > { %2320 = vst.msk [vmem:[%s4326_s17 + $0x18] sm:$0xff] %vm1031_vm8, %v2276_v48  ;;  %v2163_v30 = vmul.f32 %v2122_v61, %v4112_v63 }
 0x370   : > { %2193 = vrot.lane.b32.xlu2 %v2159_v32, %s2917_s25 }
 0x371   : > { %2201 = vrot.lane.b32.xlu0 %v2163_v30, %s2917_s25 }
 0x373   : > { %2197 = vrot.lane.b32.xlu1 %v2161_v19, %s2917_s25 }
 0x376   : > { %v2120_v0 = vpop.permute.xlu1 %2119  ;;  %v2284_v3 = vpop.permute.xlu2 %2283 }
 0x377   : > { %v2162_v56 = vmul.f32 %v2120_v0, %v4078_v54  ;;  %2324 = vst.msk [vmem:[%s4326_s17 + $0x38] sm:$0xff] %vm1031_vm8, %v2284_v3 }
 0x379   : > { %2199 = vrot.lane.b32.xlu2 %v2162_v56, %s2917_s25 }
 0x37e   : > { %v2124_v13 = vpop.permute.xlu0 %2123 }
 0x37f   : > { %v2164_v63 = vmul.f32 %v2124_v13, %v4122_v8  ;;  %v2282_v41 = vpop.permute.xlu1 %2281 }
 0x380   : > { %2323 = vst.msk [vmem:[%s4326_s17 + $0x30] sm:$0xff] %vm1031_vm8, %v2282_v41 }
 0x381   : > { %2203 = vrot.lane.b32.xlu1 %v2164_v63, %s2917_s25 }
 0x386   : > { %v2286_v29 = vpop.permute.xlu0 %2285 }
 0x387   : > { %2325 = vst.msk [vmem:[%s4326_s17 + $0x40] sm:$0xff] %vm1031_vm8, %v2286_v29 }
 0x38d   : > { %v2126_v46 = vpop.permute.xlu1 %2125 }
 0x38e   : > { %v2165_v33 = vmul.f32 %v2126_v46, %v4117_v2 }
 0x390   : > { %2205 = vrot.lane.b32.xlu2 %v2165_v33, %s2917_s25 }
 0x39d   : > { %v2128_v54 = vpop.permute.xlu2 %2127 }
 0x39e   : > { %v2166_v34 = vmul.f32 %v2128_v54, %v4159_v6 }
 0x3a0   : > { %2207 = vrot.lane.b32.xlu0 %v2166_v34, %s2917_s25 }
 0x3ad   : > { %v2130_v8 = vpop.permute.xlu0 %2129 }
 0x3ae   : > { %v2167_v36 = vmul.f32 %v2130_v8, %v4217_v38 }
 0x3b0   : > { %2209 = vrot.lane.b32.xlu1 %v2167_v36, %s2917_s25 }
 0x3b2   : > { %v2140_v23 = vpop.permute.xlu2 %2139 }
 0x3b3   : > { %v2172_v52 = vmul.f32 %v2140_v23, %v4245_v44 }
 0x3b5   : > { %2219 = vrot.lane.b32.xlu0 %v2172_v52, %s2917_s25 }
 0x3ba   : > { %v2290_v2 = vpop.permute.xlu2 %2289 }
 0x3bb   : > { %2327 = vst.msk [vmem:[%s4326_s17 + $0x50] sm:$0xff] %vm1031_vm8, %v2290_v2 }
 0x3bd   : > { %v2138_v39 = vpop.permute.xlu1 %2137 }
 0x3be   : > { %v2171_v6 = vmul.f32 %v2138_v39, %v4182_v40  ;;  %v2292_v31 = vpop.permute.xlu0 %2291 }
 0x3bf   : > { %2328 = vst.msk [vmem:[%s4326_s17 + $0x58] sm:$0xff] %vm1031_vm8, %v2292_v31 }
 0x3c0   : > { %2217 = vrot.lane.b32.xlu2 %v2171_v6, %s2917_s25 }
 0x3c2   : > { %v2134_v59 = vpop.permute.xlu2 %2133 }
 0x3c3   : > { %v2169_v38 = vmul.f32 %v2134_v59, %v4263_v26 }
 0x3c5   : > { %2213 = vrot.lane.b32.xlu0 %v2169_v38, %s2917_s25  ;;  %v2288_v22 = vpop.permute.xlu1 %2287 }
 0x3c6   : > { %2326 = vst.msk [vmem:[%s4326_s17 + $0x48] sm:$0xff] %vm1031_vm8, %v2288_v22  ;;  %v2136_v44 = vpop.permute.xlu0 %2135 }
 0x3c7   : > { %v2170_v40 = vmul.f32 %v2136_v44, %v4258_v7 }
 0x3c9   : > { %2215 = vrot.lane.b32.xlu1 %v2170_v40, %s2917_s25 }
 0x3ca   : > { %v2194_v53 = vpop.permute.xlu2 %2193 }
 0x3cb   : > { %2239 = vst.msk [vmem:[%s4397_s27 + $0x10] sm:$0xff] %vm1031_vm8, %v2194_v53 }
 0x3cd   : > { %2297 = vrot.lane.b32.xlu0 %v4308_v50, %s2916_s14  ;;  %v2132_v26 = vpop.permute.xlu1 %2131 }
 0x3ce   : > { %v2168_v24 = vmul.f32 %v2132_v26, %v4228_v14  ;;  %v2190_v1 = vpop.permute.xlu0 %2189 }
 0x3cf   : > { %2237 = vst.msk [vmem:[%s4397_s27] sm:$0xff] %vm1031_vm8, %v2190_v1 }
 0x3d0   : > { %2211 = vrot.lane.b32.xlu2 %v2168_v24, %s2917_s25 }
 0x3d1   : > { %2299 = vrot.lane.b32.xlu1 %v4329_v55, %s2916_s14 }
 0x3d3   : > { %v2200_v7 = vpop.permute.xlu2 %2199 }
 0x3d4   : > { %2242 = vst.msk [vmem:[%s4397_s27 + $0x28] sm:$0xff] %vm1031_vm8, %v2200_v7 }
 0x3d5   : > { %v2294_v18 = vpop.permute.xlu1 %2293 }
 0x3d6   : > { %2329 = vst.msk [vmem:[%s4326_s17 + $0x60] sm:$0xff] %vm1031_vm8, %v2294_v18  ;;  %v2196_v50 = vpop.permute.xlu0 %2195 }
 0x3d7   : > { %2240 = vst.msk [vmem:[%s4397_s27 + $0x18] sm:$0xff] %vm1031_vm8, %v2196_v50 }
 0x3d8   : > { %2295 = vrot.lane.b32.xlu2 %v4316_v42, %s2916_s14 }
 0x3dd   : > { %v2192_v14 = vpop.permute.xlu1 %2191 }
 0x3de   : > { %2238 = vst.msk [vmem:[%s4397_s27 + $0x8] sm:$0xff] %vm1031_vm8, %v2192_v14 }
 0x3e3   : > { %v2202_v58 = vpop.permute.xlu0 %2201 }
 0x3e4   : > { %2243 = vst.msk [vmem:[%s4397_s27 + $0x30] sm:$0xff] %vm1031_vm8, %v2202_v58 }
 0x3e5   : > { %v2198_v15 = vpop.permute.xlu1 %2197 }
 0x3e6   : > { %2241 = vst.msk [vmem:[%s4397_s27 + $0x20] sm:$0xff] %vm1031_vm8, %v2198_v15 }
 0x3ea   : > { %v2206_v47 = vpop.permute.xlu2 %2205 }
 0x3eb   : > { %2245 = vst.msk [vmem:[%s4397_s27 + $0x40] sm:$0xff] %vm1031_vm8, %v2206_v47 }
 0x3f3   : > { %v2204_v51 = vpop.permute.xlu1 %2203 }
 0x3f4   : > { %2244 = vst.msk [vmem:[%s4397_s27 + $0x38] sm:$0xff] %vm1031_vm8, %v2204_v51 }
 0x412   : > { %v2208_v42 = vpop.permute.xlu0 %2207 }
 0x413   : > { %2246 = vst.msk [vmem:[%s4397_s27 + $0x48] sm:$0xff] %vm1031_vm8, %v2208_v42 }
 0x41a   : > { %v2218_v37 = vpop.permute.xlu2 %2217 }
 0x41b   : > { %2251 = vst.msk [vmem:[%s4397_s27 + $0x70] sm:$0xff] %vm1031_vm8, %v2218_v37 }
 0x422   : > { %v2210_v16 = vpop.permute.xlu1 %2209 }
 0x423   : > { %2247 = vst.msk [vmem:[%s4397_s27 + $0x50] sm:$0xff] %vm1031_vm8, %v2210_v16 }
 0x427   : > { %v2220_v55 = vpop.permute.xlu0 %2219 }
 0x428   : > { %2252 = vst.msk [vmem:[%s4397_s27 + $0x78] sm:$0xff] %vm1031_vm8, %v2220_v55 }
 0x42a   : > { %v2212_v49 = vpop.permute.xlu2 %2211 }
 0x42b   : > { %2248 = vst.msk [vmem:[%s4397_s27 + $0x58] sm:$0xff] %vm1031_vm8, %v2212_v49 }
 0x432   : > { %v2296_v27 = vpop.permute.xlu2 %2295 }
 0x433   : > { %2330 = vst.msk [vmem:[%s4326_s17 + $0x68] sm:$0xff] %vm1031_vm8, %v2296_v27 }
 0x437   : > { %v2214_v45 = vpop.permute.xlu0 %2213 }
 0x438   : > { %2249 = vst.msk [vmem:[%s4397_s27 + $0x60] sm:$0xff] %vm1031_vm8, %v2214_v45 }
 0x43b   : > { %v2216_v11 = vpop.permute.xlu1 %2215 }
 0x43c   : > { %2250 = vst.msk [vmem:[%s4397_s27 + $0x68] sm:$0xff] %vm1031_vm8, %v2216_v11 }
 0x43f   : > { %v2298_v10 = vpop.permute.xlu0 %2297 }
 0x440   : > { %2331 = vst.msk [vmem:[%s4326_s17 + $0x70] sm:$0xff] %vm1031_vm8, %v2298_v10 }
 0x443   : > { %v2300_v21 = vpop.permute.xlu1 %2299 }
 0x444   : > { %2332 = vst.msk [vmem:[%s4326_s17 + $0x78] sm:$0xff] %vm1031_vm8, %v2300_v21 }
 0x445 PF: > { %s16_s22 = sadd.s32 1, %s2906_s22   ;;  %s4488_s18 = smov %s2898_s20 }
 0x446   : > { %p13_p7 = scmp.ge.s32.totalorder %s16_s22, 6   ;;  %s4489_s19 = smov %s2902_s21 }
 0x447   : > { %s4490_s20 = smov %s4493_s23  ;;  %s4491_s21 = smov %s4497_s24 }
 0x448   :  { %15 = sbr.rel (!%p13_p7) target bundleno = 3 (0x3), region = 84 }

</bundles_post_ra>
